<compile_context>
chip_gen: v7x
topology: tpu7x:2x2x1
jax: 0.10.0
libtpu: 0.0.40
codegen_flags: <defaults>
</compile_context>

<pallas_src>
import math

import jax
import jax.numpy as jnp
from jax.experimental import pallas as pl
from jax.experimental.pallas import tpu as pltpu


# Per-block VMEM budget (bytes) for the streaming x / out blocks.  With
# double buffering that is 2 in-bufs + 2 out-bufs = ~32 MiB, inside the
# 48 MiB scoped limit below and inside v7x's 64 MiB physical VMEM.
_BLOCK_BYTES = 8 * 1024 * 1024

# Below this total size (or when no lane-dense >=128-wide view exists) a
# plain XLA add beats the fixed pallas_call / per-step overhead.
_XLA_FALLBACK_BYTES = 1 * 1024 * 1024

# Sublane packing unit per itemsize: f32 tiles are (8,128), bf16 (16,128),
# int8/fp8 (32,128).  TR must be a multiple of this to avoid packed-sublane
# relayout / masked accesses.
_SUBLANE_UNIT = {4: 8, 2: 16, 1: 32}


def _broadcast_add_kernel(x_ref, b_ref, o_ref):
    # x_ref: (TR, TL); b_ref: (1, TL) broadcast over rows by jnp.
    o_ref[...] = x_ref[...] + b_ref[...]


def _round_down(v, unit):
    return max(unit, (v // unit) * unit)


def _tiled_broadcast_add(x2d, bias_row):
    """x2d: (R, L) row-major view; bias_row: (1, L). Returns x2d + bias_row."""
    R, L = x2d.shape
    itemsize = jnp.dtype(x2d.dtype).itemsize
    sub = _SUBLANE_UNIT.get(itemsize, 8)

    # ---- Lane tile: prefer full rows (one contiguous HBM transfer per block);
    # otherwise the largest multiple of 128 that keeps `sub` rows in budget.
    max_lanes = max(128, (_BLOCK_BYTES // (sub * itemsize)) // 128 * 128)
    TL = L if L <= max_lanes else max_lanes

    # ---- Row tile: multiple of the sublane unit, capped by the block budget.
    row_cap = max(sub, (_BLOCK_BYTES // (TL * itemsize)) // sub * sub)
    if R <= sub:
        TR = R                      # full (small) dim is always legal
    else:
        TR = _round_down(min(row_cap, R), sub)

    # ---- Megacore: if everything fits in a single block, split the row axis
    # in two so both v7x TensorCores get a parallel block.
    if pl.cdiv(R, TR) == 1 and pl.cdiv(L, TL) == 1 and R > sub:
        half = -(-R // 2)
        TR = ((half + sub - 1) // sub) * sub

    n_lane = pl.cdiv(L, TL)
    n_row = pl.cdiv(R, TR)

    cost = pl.CostEstimate(
        flops=int(R * L),
        transcendentals=0,
        bytes_accessed=int(2 * R * L * itemsize + L * itemsize),
    )

    return pl.pallas_call(
        _broadcast_add_kernel,
        out_shape=jax.ShapeDtypeStruct((R, L), x2d.dtype),
        grid_spec=pltpu.PrefetchScalarGridSpec(
            num_scalar_prefetch=0,
            # Lane axis OUTER: the bias block index (0, j) is constant over the
            # inner row loop, so its DMA is not re-issued every step.
            grid=(n_lane, n_row),
            in_specs=[
                pl.BlockSpec((TR, TL), lambda j, i: (i, j)),
                pl.BlockSpec((1, TL), lambda j, i: (0, j)),
            ],
            out_specs=pl.BlockSpec((TR, TL), lambda j, i: (i, j)),
        ),
        compiler_params=pltpu.CompilerParams(
            dimension_semantics=("parallel", "parallel"),
            vmem_limit_bytes=48 * 1024 * 1024,   # fits v7x's 64 MiB VMEM
        ),
        cost_estimate=cost,
    )(x2d, bias_row)


class AddBias:
    """JAX/Pallas mirror of the PyTorch AddBias module."""

    def __init__(self, bias):
        bias = jnp.asarray(bias)
        # (C,) -> (C, 1), matching nn.Parameter(bias.unsqueeze(1)).
        self._bias = jnp.reshape(bias, (-1, 1))
        self._bias_vec = jnp.reshape(bias, (-1,))
        # Memoized (1, L) bias-row variants keyed by (dtype, repeat, tile).
        self._row_cache = {}

    def _bias_row(self, dtype, inner_repeat=1, outer_tile=1):
        key = (jnp.dtype(dtype).name, int(inner_repeat), int(outer_tile))
        row = self._row_cache.get(key)
        if row is not None:
            return row
        v = self._bias_vec.astype(dtype)
        if inner_repeat > 1:
            v = jnp.repeat(v, inner_repeat)   # bias[c] repeated H*W times, contiguously
        if outer_tile > 1:
            v = jnp.tile(v, outer_tile)       # whole (C,) bias tiled lw//C times
        row = v.reshape(1, -1)
        # Only cache concrete arrays (avoid leaking tracers across jit traces).
        if not isinstance(v, jax.core.Tracer):
            self._row_cache[key] = row
        return row

    def __call__(self, x):
        C = self._bias.shape[0]
        itemsize = jnp.dtype(x.dtype).itemsize
        total_bytes = x.size * itemsize

        if x.ndim == 2:
            N, Cx = x.shape
            assert Cx == C
            # Pick a lane-dense zero-copy 2-D view.
            if C % 128 == 0:
                lw, tile = C, 1
            else:
                cand = (C * 128) // math.gcd(C, 128)   # lcm(C, 128)
                if cand <= 4096 and (N * C) % cand == 0:
                    lw, tile = cand, cand // C
                else:
                    lw, tile = C, 1
            if total_bytes < _XLA_FALLBACK_BYTES or lw < 128:
                # Tiny or lane-sparse: XLA's fused add beats kernel overhead.
                return x + self._bias_vec.astype(x.dtype).reshape(1, C)
            x2 = x.reshape((N * C) // lw, lw)
            y2 = _tiled_broadcast_add(x2, self._bias_row(x.dtype, outer_tile=tile))
            return y2.reshape(N, C)

        elif x.ndim == 4:
            N, Cx, H, W = x.shape
            assert Cx == C
            L = C * H * W
            if total_bytes < _XLA_FALLBACK_BYTES or L < 128:
                return x + self._bias_vec.astype(x.dtype).reshape(1, C, 1, 1)
            # Transpose-free, lane-dense: NCHW viewed zero-copy as (N, C*H*W),
            # bias row has bias[c] repeated H*W times -> full-width stores
            # even when H*W is not a multiple of 128.
            x2 = x.reshape(N, L)
            y2 = _tiled_broadcast_add(x2, self._bias_row(x.dtype, inner_repeat=H * W))
            return y2.reshape(N, C, H, W)

        else:
            raise ValueError("AddBias expects a 2-D or 4-D input")


if __name__ == "__main__":
    key = jax.random.PRNGKey(0)
    keys = jax.random.split(key, 8)

    # ---- Small shapes consistent with the module (batch=2, channels=4, spatial=16).
    # These intentionally exercise the tiny-input XLA fallback path.
    C = 4
    bias = jax.random.normal(keys[0], (C,), dtype=jnp.float32)
    mod = AddBias(bias)

    x2 = jax.random.normal(keys[1], (2, C), dtype=jnp.float32)
    y2 = jax.block_until_ready(mod(x2))
    assert y2.shape == (2, C) and jnp.allclose(y2, x2 + bias.reshape(1, C), atol=1e-6)

    x4 = jax.random.normal(keys[2], (2, C, 16, 16), dtype=jnp.float32)
    y4 = jax.block_until_ready(mod(x4))
    assert y4.shape == x4.shape and jnp.allclose(y4, x4 + bias.reshape(1, C, 1, 1), atol=1e-6)

    # ---- Pallas paths (large enough to clear the XLA-fallback threshold).
    # 2-D, C a multiple of 128: direct (N, C) lane-dense path (row axis split in 2).
    C1 = 256
    b1 = jax.random.normal(keys[3], (C1,), dtype=jnp.float32)
    xa = jax.random.normal(keys[4], (2048, C1), dtype=jnp.float32)        # 2 MiB
    ya = jax.block_until_ready(AddBias(b1)(xa))
    assert jnp.allclose(ya, xa + b1.reshape(1, C1), atol=1e-6)

    # 2-D, small C: lcm(C, 128) lane-dense repack path.
    C2 = 32
    b2 = jax.random.normal(keys[5], (C2,), dtype=jnp.float32)
    xb = jax.random.normal(keys[6], (16384, C2), dtype=jnp.float32)       # 2 MiB
    yb = jax.block_until_ready(AddBias(b2)(xb))
    assert jnp.allclose(yb, xb + b2.reshape(1, C2), atol=1e-6)

    # 4-D, H*W NOT a multiple of 128 (56x56): transpose-free (N, C*H*W) path.
    C3 = 16
    b3 = jax.random.normal(keys[7], (C3,), dtype=jnp.float32)
    xc = jax.random.normal(jax.random.PRNGKey(1), (8, C3, 56, 56), dtype=jnp.float32)
    yc = jax.block_until_ready(AddBias(b3)(xc))
    assert jnp.allclose(yc, xc + b3.reshape(1, C3, 1, 1), atol=1e-6)

    # 4-D bf16: exercises the dtype-aware (16, 128) sublane unit.
    C4 = 8
    b4 = jax.random.normal(jax.random.PRNGKey(2), (C4,), dtype=jnp.bfloat16)
    xd = jax.random.normal(jax.random.PRNGKey(3), (16, C4, 64, 64), dtype=jnp.bfloat16)
    yd = jax.block_until_ready(AddBias(b4)(xd))
    assert yd.dtype == jnp.bfloat16
    assert jnp.allclose(yd.astype(jnp.float32),
                        (xd + b4.reshape(1, C4, 1, 1)).astype(jnp.float32),
                        atol=1e-2, rtol=1e-2)

    print("KERNEL_OK")
</pallas_src>

<mosaic_0001>
module attributes {stable_mosaic.version = 11 : i64} {
  func.func @_broadcast_add_kernel(%arg0: i32, %arg1: i32, %arg2: memref<1024x256xf32, #tpu.memory_space<vmem>>, %arg3: memref<1x256xf32, #tpu.memory_space<vmem>>, %arg4: memref<1024x256xf32, #tpu.memory_space<vmem>>) attributes {dimension_semantics = [#tpu.dimension_semantics<parallel>, #tpu.dimension_semantics<parallel>], iteration_bounds = array<i64: 1, 2>, scalar_prefetch = 0 : i64, scratch_operands = 0 : i64, tpu.core_type = #tpu.core_type<tc>, window_params = [{transform_indices = @transform_0, window_bounds = array<i64: 1024, 256>}, {transform_indices = @transform_1, window_bounds = array<i64: 1, 256>}, {transform_indices = @transform_2, window_bounds = array<i64: 1024, 256>}]} {
    %c0 = arith.constant 0 : index
    %c0_0 = arith.constant 0 : index
    %0 = vector.load %arg2[%c0, %c0_0] : memref<1024x256xf32, #tpu.memory_space<vmem>>, vector<1024x256xf32>
    %c0_1 = arith.constant 0 : index
    %c0_2 = arith.constant 0 : index
    %1 = vector.load %arg3[%c0_1, %c0_2] : memref<1x256xf32, #tpu.memory_space<vmem>>, vector<1x256xf32>
    %2 = vector.broadcast %1 : vector<1x256xf32> to vector<1024x256xf32>
    %3 = arith.addf %0, %2 : vector<1024x256xf32>
    %c0_3 = arith.constant 0 : index
    %c0_4 = arith.constant 0 : index
    %4 = vector.load %arg4[%c0_3, %c0_4] : memref<1024x256xf32, #tpu.memory_space<vmem>>, vector<1024x256xf32>
    tpu.vector_store %arg4[%c0_3, %c0_4], %3 {strides = array<i32>} : memref<1024x256xf32, #tpu.memory_space<vmem>>, vector<1024x256xf32>,
    return
  }
  func.func @transform_0(%arg0: i32, %arg1: i32) -> (i32, i32) {
    %c0_i32 = arith.constant 0 : i32
    return %arg1, %arg0 : i32, i32
  }
  func.func @transform_1(%arg0: i32, %arg1: i32) -> (i32, i32) {
    %c0_i32 = arith.constant 0 : i32
    %c0_i32_0 = arith.constant 0 : i32
    return %c0_i32, %arg0 : i32, i32
  }
  func.func @transform_2(%arg0: i32, %arg1: i32) -> (i32, i32) {
    %c0_i32 = arith.constant 0 : i32
    return %arg1, %arg0 : i32, i32
  }
}

</mosaic_0001>

<bundles_post_ra>
// kernel: tpu_custom_call.1
= control target key start
LH: loop header
LB: loop body
LE: loop exit
PB: predicated region body
PF: predicated region fallthrough
CT: control target
= control target key end

     0   :  { %7 = vsyncpa [#allocation3], 0  ;;  %s2373_s0 = inlined_call_operand.hbm [shape: f32[2048,256], index: 0, kind: input, shape index: {}]   ;;  %s2374_s1 = inlined_call_operand.hbm [shape: f32[1,256], index: 1, kind: input, shape index: {}]   ;;  %s2375_s2 = inlined_call_operand.hbm [shape: f32[2048,256], index: 2, kind: output, shape index: {}]  }
   0x1   :  { %9 = vsyncpa [#allocation3 + $0x1], 0 }
   0x2   :  { %10 = vsyncpa [#allocation6], 0 }
   0x3   :  { %11 = vsyncpa [#allocation4], 0 }
   0x4   :  { %13 = vsyncpa [#allocation4 + $0x1], 0  ;;  %s1371_s9 = smov 0   ;;  %s1373_s10 = smov 0  }
   0x5   :  { %s1375_s11 = smov 0   ;;  %s1377_s12 = smov 0  }
   0x6   :  { %s1379_s13 = smov 0   ;;  %s1381_s14 = smov 0  }
   0x7 LB: > { %s1103_s15 = sadd.s32 4294967295, %s1347_s14   ;;  %s1104_s16 = sadd.s32 4294967294, %s1347_s14   ;;  %s1347_s14 = sphi %s1381_s14, %s19_s14   ;;  %s1343_s13 = sphi %s1379_s13, %s2403_s13   ;;  %s1339_s12 = sphi %s1377_s12, %s2402_s12   ;;  %s1335_s11 = sphi %s1375_s11, %s2401_s11   ;;  %s1331_s10 = sphi %s1373_s10, %s2400_s10   ;;  %s1327_s9 = sphi %s1371_s9, %s2399_s9  }
   0x8   : > { %s40_s17 = sadd.s32 1, %s1335_s11  ;;  %p47_p0 = scmp.ne.s32.totalorder %s1335_s11, %s1331_s10 }
   0x9   : > { %p48_p1 = scmp.eq.s32.totalorder %s1347_s14, 0  ;;  %p53_p2 = scmp.ne.s32.totalorder %s1331_s10, %s1327_s9 }
   0xa   : > { %p1409_p3 = scmp.eq.s32.totalorder %s1103_s15, 0  ;;  %p105_p4 = scmp.eq.s32.totalorder %s1103_s15, 1 }
   0xb   : > { %p1413_p5 = por %p48_p1, %p47_p0  ;;  %p111_p6 = scmp.eq.s32.totalorder %s1104_s16, 1 }
   0xc   : > { %s2382_s18 = scalar_select %p1409_p3, 1, 0 }
   0xd   : > { %p1419_p7 = por %p1409_p3, %p53_p2  ;;  %p1423_p8 = por %p105_p4, %p47_p0 }
   0xe   : > { %p1427_p9 = por %p111_p6, %p53_p2  ;;  %p1105_p10 = scmp.ge.s32.totalorder %s1347_s14, 1 }
   0xf   : > { %s2384_s20 = scalar_select %p1419_p7, 1, 0 }
  0x10   : > { %s2385_s21 = scalar_select %p1423_p8, 1, 0 }
  0x11   : > { %s2386_s22 = scalar_select %p1427_p9, 1, 0 }
  0x12   : > { %p118_p11 = scmp.lt.s32.totalorder %s1347_s14, 3  ;;  %s1349_s24 = smov [#allocation5]  }
  0x13   : > { %s134_s25 = sshll.u32 %s1349_s24, 4  ;;  %p1147_p1 = scmp.lt.s32.totalorder %s1347_s14, 2  ;;  %s135_s25 = int_to_ptr.vmem [resolvable:$true] %s134_s25 }
  0x14   : > { %p1434_p13 = pnand %p1105_p10, %p118_p11  ;;  %s28_s28 = sadd.s32 1, %s1343_s13 }
  0x15   : > { %p1443_p4 = pnand %p1147_p1, %p1413_p5  ;;  %p1454_p6 = scmp.ge.s32.totalorder %s28_s28, 2 }
  0x16   : > { %s2387_s23 = scalar_select %p1434_p13, 1, 0 }
  0x17   : > { %p1134_p0 = pneg %p1434_p13  ;;  %s145_s30 = sand.u32 1, %s1335_s11  }
  0x18   : > { %s2388_s26 = scalar_select %p1443_p4, 1, 0 }
  0x19   : > { %p1449_p2 = pnand %p1134_p0, %p1409_p3  ;;  %s1203_s5 = scalar_lea.hbm %s2374_s1, 32 }
  0x1a   : > { %s2390_s29 = scalar_select %p1454_p6, 1, 0 }
  0x1b   : > { %p1204_p5 = scmp.ne.s32.totalorder %s2374_s1, %s1203_s5  ;;  %p1205_p10 = pneg %p1449_p2 }
  0x1c   : > { %p1210_p0 = scmp.lt.u32.totalorder %s1203_s5, %s2374_s1 }
  0x1d   : > { %p1206_p11 = pnand %p1205_p10, %p1204_p5 }
  0x1f   : > { %p1207_p1 = pneg %p1206_p11 }
  0x21   : > { %p1212_p12 = pnand %p1210_p0, %p1207_p1 }
  0x23   : > { %1215 = shalt.err (!%p1212_p12)
}
  0x24   : > { %s1216_s16 = scalar_lea.vmem %s135_s25, 32  ;;  %p1224_p7 = scmp.lt.s32.totalorder %s135_s25, %s135_s25 }
  0x25   : > { %p1217_p9 = scmp.ne.s32.totalorder %s135_s25, %s1216_s16  ;;  %p1225_p13 = scmp.lt.s32.totalorder %s1216_s16, %s1216_s16 }
  0x27   : > { %p1219_p8 = pnand %p1217_p9, %p1205_p10  ;;  %p1226_p4 = por %p1225_p13, %p1224_p7 }
  0x29   : > { %p1220_p3 = pneg %p1219_p8 }
  0x2b   : > { %p1227_p6 = pnand %p1226_p4, %p1220_p3 }
  0x2d   : > { %1230 = shalt.err (!%p1227_p6)
}
  0x2e   : > { %1137 = dma.hbm_to_vmem [thread:$0]  (!%p1449_p2), %s2374_s1, 32, %s135_s25, [#allocation6]  }
  0x2f   : > { %p2391_p9 = scmp.ne.s32.totalorder %s2390_s29, 0  ;;  %s1108_s3 = sshll.u32 %s145_s30, 11 }
  0x30   : > { %s1123_s5 = sshll.u32 %s1343_s13, 15  ;;  %s149_s8 = scalar_lea.vmem [#allocation2], %s1108_s3 }
  0x31   : > { %s2405_s28 = smov (%p2391_p9, %s28_s28), 0  ;;  %s1485_s7 = scalar_lea.hbm %s2373_s0, %s1123_s5 }
  0x32   : > { %s35_s4 = ssub.s32 %s1343_s13, %s2405_s28  ;;  %s159_s15 = sshll.u32 %s149_s8, 4  ;;  %s1492_s15 = int_to_ptr.vmem [resolvable:$true] %s159_s15 }
  0x33   : > { %p38_p3 = scmp.eq.s32.totalorder %s35_s4, 0  ;;  %s1494_s29 = scalar_lea.sflag [#allocation3], %s145_s30 }
  0x34   : > { %s1231_s16 = scalar_lea.hbm %s1485_s7, 32768  ;;  %p2392_p8 = scmp.ne.s32.totalorder %s2388_s26, 0 }
  0x35   : > { %s1490_s25 = scalar_select %p38_p3, %s1335_s11, %s40_s17  }
  0x36   : > { %p1232_p7 = scmp.ne.s32.totalorder %s1485_s7, %s1231_s16  ;;  %p1233_p12 = pneg %p2392_p8 }
  0x37   : > { %s1236_s3 = scalar_lea.hbm %s2373_s0, 65536  ;;  %p1237_p2 = scmp.lt.u32.totalorder %s1485_s7, %s2373_s0 }
  0x38   : > { %p1234_p13 = pnand %p1233_p12, %p1232_p7  ;;  %p1238_p6 = scmp.lt.u32.totalorder %s1236_s3, %s1231_s16 }
  0x39   : > { %p1240_p10 = scmp.lt.u32.totalorder %s1231_s16, %s1485_s7 }
  0x3a   : > { %p1235_p4 = pneg %p1234_p13  ;;  %p1239_p5 = por %p1238_p6, %p1237_p2 }
  0x3c   : > { %p1241_p11 = por %p1240_p10, %p1239_p5 }
  0x3e   : > { %p1242_p1 = pnand %p1241_p11, %p1235_p4 }
  0x40   : > { %1245 = shalt.err (!%p1242_p1)
}
  0x41   : > { %s1246_s17 = scalar_lea.vmem %s1492_s15, 32768  ;;  %s1350_s30 = smov [#allocation2]  }
  0x42   : > { %p1247_p0 = scmp.ne.s32.totalorder %s1492_s15, %s1246_s17  ;;  %s1251_s27 = sshll.u32 %s1350_s30, 4  ;;  %s1252_s27 = int_to_ptr.vmem [resolvable:$false] %s1251_s27 }
  0x43   : > { %s1253_s6 = scalar_lea.vmem %s1252_s27, 65536  ;;  %p1254_p7 = scmp.lt.s32.totalorder %s1492_s15, %s1252_s27 }
  0x44   : > { %p1249_p9 = pnand %p1247_p0, %p1233_p12  ;;  %p1255_p13 = scmp.lt.s32.totalorder %s1253_s6, %s1246_s17 }
  0x46   : > { %p1250_p3 = pneg %p1249_p9  ;;  %p1256_p2 = por %p1255_p13, %p1254_p7 }
  0x48   : > { %p1257_p6 = pnand %p1256_p2, %p1250_p3 }
  0x4a   : > { %1260 = shalt.err (!%p1257_p6)
}
  0x4b   : > { %s1351_s8 = smov 256   ;;  %s1352_s16 = smov 16  }
  0x4c   : > { %1141 = dma.hbm_to_vmem [thread:$0]  (!%p2392_p8), %s1485_s7, 32768, %s1492_s15, %s1494_s29, %s1351_s8, %s1351_s8, %s1352_s16  }
  0x4d   : > { %p2393_p12 = scmp.ne.s32.totalorder %s2387_s23, 0 }
  0x4e   : > { %s1525_s19 = sand.u32 (!%p2393_p12), 1, %s1331_s10   ;;  %p2394_p4 = scmp.ne.s32.totalorder (!%p2393_p12), %s2384_s20, 0 }
  0x4f   : > { %171 = sbr.rel (%p2393_p12) target bundleno = 242 (0xf2), region = 28  ;;  %s1113_s24 = sshll.u32 (!%p2393_p12), %s1525_s19, 11 }
  0x50   : > { %s174_s3 = scalar_lea.sflag (!%p2393_p12), [#allocation3], %s1525_s19  ;;  %s1531_s4 = scalar_lea.vmem (!%p2393_p12), [#allocation2], %s1113_s24 }
  0x56   : > { %1314 = dma.done.wait (%p2394_p4), %s174_s3, 32768  }
  0x57   : > { %1316 = vsyncadd (%p2394_p4), %s174_s3, 4294934528  ;;  %p2395_p8 = scmp.ne.s32.totalorder %s2382_s18, 0 }
  0x59   : > { %1318 = dma.done.wait (%p2395_p8), [#allocation6], 32  }
  0x5a   : > { %1320 = vsyncadd (%p2395_p8), [#allocation6], 4294967264  ;;  %v465_v0 = vlaneseq  ;;  %v207_v4 = vld [vmem:[%s1531_s4] sm:$0xff]  ;;  %v208_v6 = vld [vmem:[%s1531_s4 + $0x8] sm:$0xff]  ;;  %s1569_s18 = scalar_lea.vmem [#allocation7], %s1113_s24  ;;  %s1125_s20 = sshll.u32 %s1339_s12, 15 }
  0x5b   : > { %v463_v5 = vld [vmem:[#allocation5] sm:$0x3]  ;;  %v209_v9 = vld [vmem:[%s1531_s4 + $0x10] sm:$0xff]  ;;  %v210_v10 = vld [vmem:[%s1531_s4 + $0x18] sm:$0xff]  ;;  %s1004_s23 = sshll.u32 %s1569_s18, 4  ;;  %s2312_s7 = scalar_lea.hbm %s2375_s2, %s1125_s20  ;;  %s2314_s23 = int_to_ptr.vmem [resolvable:$true] %s1004_s23 }
  0x5c   : > { %v466_v1 = vshrl.u32 %v465_v0, 7  ;;  %v211_v11 = vld [vmem:[%s1531_s4 + $0x20] sm:$0xff]  ;;  %v212_v12 = vld [vmem:[%s1531_s4 + $0x28] sm:$0xff]  ;;  %v213_v13 = vld [vmem:[%s1531_s4 + $0x30] sm:$0xff]  ;;  %s988_s15 = scalar_lea.sflag [#allocation4], %s1525_s19  ;;  %s1261_s29 = scalar_lea.vmem %s2314_s23, 32768 }
  0x5d   : > { %v214_v14 = vld [vmem:[%s1531_s4 + $0x38] sm:$0xff]  ;;  %v215_v19 = vld [vmem:[%s1531_s4 + $0x40] sm:$0xff]  ;;  %v216_v20 = vld [vmem:[%s1531_s4 + $0x48] sm:$0xff]  ;;  %p1262_p5 = scmp.ne.s32.totalorder %s2314_s23, %s1261_s29  ;;  %p2396_p10 = scmp.ne.s32.totalorder %s2385_s21, 0 }
  0x5e   : > { %v467_v2 = vsub.s32 0, %v466_v1  ;;  %v471_v3 = vsub.s32 1, %v466_v1  ;;  %v217_v21 = vld [vmem:[%s1531_s4 + $0x50] sm:$0xff]  ;;  %v218_v26 = vld [vmem:[%s1531_s4 + $0x58] sm:$0xff]  ;;  %v219_v27 = vld [vmem:[%s1531_s4 + $0x60] sm:$0xff]  ;;  %s1353_s5 = smov [#allocation7]  }
  0x5f   : > { %v220_v28 = vld [vmem:[%s1531_s4 + $0x68] sm:$0xff]  ;;  %v221_v33 = vld [vmem:[%s1531_s4 + $0x70] sm:$0xff]  ;;  %v222_v34 = vld [vmem:[%s1531_s4 + $0x78] sm:$0xff]  ;;  %p1263_p11 = pnand %p1262_p5, %p2396_p10  ;;  %s1265_s17 = sshll.u32 %s1353_s5, 4  ;;  %s1266_s17 = int_to_ptr.vmem [resolvable:$false] %s1265_s17 }
  0x60   : > { %v1543_v7 = vrot.slane %v463_v5, %v467_v2  ;;  %v1545_v8 = vrot.slane %v463_v5, %v471_v3  ;;  %v223_v35 = vld [vmem:[%s1531_s4 + $0x80] sm:$0xff]  ;;  %v224_v40 = vld [vmem:[%s1531_s4 + $0x88] sm:$0xff]  ;;  %v225_v41 = vld [vmem:[%s1531_s4 + $0x90] sm:$0xff]  ;;  %s1267_s30 = scalar_lea.vmem %s1266_s17, 65536  ;;  %p1268_p0 = scmp.lt.s32.totalorder %s2314_s23, %s1266_s17 }
  0x61   : > { %v226_v42 = vld [vmem:[%s1531_s4 + $0x98] sm:$0xff]  ;;  %v227_v47 = vld [vmem:[%s1531_s4 + $0xa0] sm:$0xff]  ;;  %v228_v48 = vld [vmem:[%s1531_s4 + $0xa8] sm:$0xff]  ;;  %p1264_p1 = pneg %p1263_p11  ;;  %p1269_p9 = scmp.lt.s32.totalorder %s1267_s30, %s1261_s29 }
  0x62   : > { %v475_v15 = vadd.f32 %v1543_v7, %v207_v4  ;;  %v476_v16 = vadd.f32 %v1545_v8, %v208_v6  ;;  %v477_v17 = vadd.f32 %v1543_v7, %v209_v9  ;;  %v478_v18 = vadd.f32 %v1545_v8, %v210_v10  ;;  %v229_v49 = vld [vmem:[%s1531_s4 + $0xb0] sm:$0xff]  ;;  %v230_v53 = vld [vmem:[%s1531_s4 + $0xb8] sm:$0xff]  ;;  %v231_v54 = vld [vmem:[%s1531_s4 + $0xc0] sm:$0xff] }
  0x63   : > { %v479_v22 = vadd.f32 %v1543_v7, %v211_v11  ;;  %v480_v23 = vadd.f32 %v1545_v8, %v212_v12  ;;  %v481_v24 = vadd.f32 %v1543_v7, %v213_v13  ;;  %v482_v25 = vadd.f32 %v1545_v8, %v214_v14  ;;  %v232_v55 = vld [vmem:[%s1531_s4 + $0xc8] sm:$0xff]  ;;  %v233_v59 = vld [vmem:[%s1531_s4 + $0xd0] sm:$0xff]  ;;  %v234_v60 = vld [vmem:[%s1531_s4 + $0xd8] sm:$0xff]  ;;  %p1270_p3 = por %p1269_p9, %p1268_p0 }
  0x64   : > { %731 = vst [vmem:[%s1569_s18] sm:$0xff] %v475_v15  ;;  %732 = vst [vmem:[%s1569_s18 + $0x8] sm:$0xff] %v476_v16  ;;  %v483_v29 = vadd.f32 %v1543_v7, %v215_v19  ;;  %v484_v30 = vadd.f32 %v1545_v8, %v216_v20  ;;  %v485_v31 = vadd.f32 %v1543_v7, %v217_v21  ;;  %v235_v61 = vld [vmem:[%s1531_s4 + $0xe0] sm:$0xff]  ;;  %v236_v1 = vld [vmem:[%s1531_s4 + $0xe8] sm:$0xff] }
  0x65   : > { %733 = vst [vmem:[%s1569_s18 + $0x10] sm:$0xff] %v477_v17  ;;  %734 = vst [vmem:[%s1569_s18 + $0x18] sm:$0xff] %v478_v18  ;;  %v486_v32 = vadd.f32 %v1545_v8, %v218_v26  ;;  %v487_v36 = vadd.f32 %v1543_v7, %v219_v27  ;;  %v488_v37 = vadd.f32 %v1545_v8, %v220_v28  ;;  %v237_v2 = vld [vmem:[%s1531_s4 + $0xf0] sm:$0xff]  ;;  %v238_v3 = vld [vmem:[%s1531_s4 + $0xf8] sm:$0xff]  ;;  %p1271_p7 = pnand %p1270_p3, %p1264_p1 }
  0x66   : > { %735 = vst [vmem:[%s1569_s18 + $0x20] sm:$0xff] %v479_v22  ;;  %736 = vst [vmem:[%s1569_s18 + $0x28] sm:$0xff] %v480_v23  ;;  %v489_v38 = vadd.f32 %v1543_v7, %v221_v33  ;;  %v490_v39 = vadd.f32 %v1545_v8, %v222_v34  ;;  %v491_v43 = vadd.f32 %v1543_v7, %v223_v35  ;;  %v239_v9 = vld [vmem:[%s1531_s4 + $0x100] sm:$0xff]  ;;  %v240_v10 = vld [vmem:[%s1531_s4 + $0x108] sm:$0xff] }
  0x67   : > { %737 = vst [vmem:[%s1569_s18 + $0x30] sm:$0xff] %v481_v24  ;;  %738 = vst [vmem:[%s1569_s18 + $0x38] sm:$0xff] %v482_v25  ;;  %v492_v44 = vadd.f32 %v1545_v8, %v224_v40  ;;  %v493_v45 = vadd.f32 %v1543_v7, %v225_v41  ;;  %v494_v46 = vadd.f32 %v1545_v8, %v226_v42  ;;  %v241_v11 = vld [vmem:[%s1531_s4 + $0x110] sm:$0xff]  ;;  %v242_v15 = vld [vmem:[%s1531_s4 + $0x118] sm:$0xff] }
  0x68   : > { %739 = vst [vmem:[%s1569_s18 + $0x40] sm:$0xff] %v483_v29  ;;  %740 = vst [vmem:[%s1569_s18 + $0x48] sm:$0xff] %v484_v30  ;;  %v495_v50 = vadd.f32 %v1543_v7, %v227_v47  ;;  %v496_v51 = vadd.f32 %v1545_v8, %v228_v48  ;;  %v497_v52 = vadd.f32 %v1543_v7, %v229_v49  ;;  %v243_v16 = vld [vmem:[%s1531_s4 + $0x120] sm:$0xff]  ;;  %v244_v17 = vld [vmem:[%s1531_s4 + $0x128] sm:$0xff] }
  0x69   : > { %741 = vst [vmem:[%s1569_s18 + $0x50] sm:$0xff] %v485_v31  ;;  %742 = vst [vmem:[%s1569_s18 + $0x58] sm:$0xff] %v486_v32  ;;  %v498_v56 = vadd.f32 %v1545_v8, %v230_v53  ;;  %v499_v57 = vadd.f32 %v1543_v7, %v231_v54  ;;  %v500_v58 = vadd.f32 %v1545_v8, %v232_v55  ;;  %v245_v21 = vld [vmem:[%s1531_s4 + $0x130] sm:$0xff]  ;;  %v246_v22 = vld [vmem:[%s1531_s4 + $0x138] sm:$0xff] }
  0x6a   : > { %743 = vst [vmem:[%s1569_s18 + $0x60] sm:$0xff] %v487_v36  ;;  %744 = vst [vmem:[%s1569_s18 + $0x68] sm:$0xff] %v488_v37  ;;  %v501_v62 = vadd.f32 %v1543_v7, %v233_v59  ;;  %v502_v63 = vadd.f32 %v1545_v8, %v234_v60  ;;  %v503_v0 = vadd.f32 %v1543_v7, %v235_v61  ;;  %v247_v23 = vld [vmem:[%s1531_s4 + $0x140] sm:$0xff]  ;;  %v248_v27 = vld [vmem:[%s1531_s4 + $0x148] sm:$0xff] }
  0x6b   : > { %745 = vst [vmem:[%s1569_s18 + $0x70] sm:$0xff] %v489_v38  ;;  %746 = vst [vmem:[%s1569_s18 + $0x78] sm:$0xff] %v490_v39  ;;  %v504_v4 = vadd.f32 %v1545_v8, %v236_v1  ;;  %v505_v5 = vadd.f32 %v1543_v7, %v237_v2  ;;  %v506_v6 = vadd.f32 %v1545_v8, %v238_v3  ;;  %v249_v28 = vld [vmem:[%s1531_s4 + $0x150] sm:$0xff]  ;;  %v250_v29 = vld [vmem:[%s1531_s4 + $0x158] sm:$0xff] }
  0x6c   : > { %747 = vst [vmem:[%s1569_s18 + $0x80] sm:$0xff] %v491_v43  ;;  %748 = vst [vmem:[%s1569_s18 + $0x88] sm:$0xff] %v492_v44  ;;  %v507_v12 = vadd.f32 %v1543_v7, %v239_v9  ;;  %v508_v13 = vadd.f32 %v1545_v8, %v240_v10  ;;  %v509_v14 = vadd.f32 %v1543_v7, %v241_v11  ;;  %v251_v33 = vld [vmem:[%s1531_s4 + $0x160] sm:$0xff]  ;;  %v252_v34 = vld [vmem:[%s1531_s4 + $0x168] sm:$0xff] }
  0x6d   : > { %749 = vst [vmem:[%s1569_s18 + $0x90] sm:$0xff] %v493_v45  ;;  %750 = vst [vmem:[%s1569_s18 + $0x98] sm:$0xff] %v494_v46  ;;  %v510_v18 = vadd.f32 %v1545_v8, %v242_v15  ;;  %v511_v19 = vadd.f32 %v1543_v7, %v243_v16  ;;  %v512_v20 = vadd.f32 %v1545_v8, %v244_v17  ;;  %v253_v35 = vld [vmem:[%s1531_s4 + $0x170] sm:$0xff]  ;;  %v254_v39 = vld [vmem:[%s1531_s4 + $0x178] sm:$0xff] }
  0x6e   : > { %751 = vst [vmem:[%s1569_s18 + $0xa0] sm:$0xff] %v495_v50  ;;  %752 = vst [vmem:[%s1569_s18 + $0xa8] sm:$0xff] %v496_v51  ;;  %v513_v24 = vadd.f32 %v1543_v7, %v245_v21  ;;  %v514_v25 = vadd.f32 %v1545_v8, %v246_v22  ;;  %v515_v26 = vadd.f32 %v1543_v7, %v247_v23  ;;  %v255_v40 = vld [vmem:[%s1531_s4 + $0x180] sm:$0xff]  ;;  %v256_v41 = vld [vmem:[%s1531_s4 + $0x188] sm:$0xff] }
  0x6f   : > { %753 = vst [vmem:[%s1569_s18 + $0xb0] sm:$0xff] %v497_v52  ;;  %754 = vst [vmem:[%s1569_s18 + $0xb8] sm:$0xff] %v498_v56  ;;  %v516_v30 = vadd.f32 %v1545_v8, %v248_v27  ;;  %v517_v31 = vadd.f32 %v1543_v7, %v249_v28  ;;  %v518_v32 = vadd.f32 %v1545_v8, %v250_v29  ;;  %v257_v45 = vld [vmem:[%s1531_s4 + $0x190] sm:$0xff]  ;;  %v258_v46 = vld [vmem:[%s1531_s4 + $0x198] sm:$0xff] }
  0x70   : > { %755 = vst [vmem:[%s1569_s18 + $0xc0] sm:$0xff] %v499_v57  ;;  %756 = vst [vmem:[%s1569_s18 + $0xc8] sm:$0xff] %v500_v58  ;;  %v519_v36 = vadd.f32 %v1543_v7, %v251_v33  ;;  %v520_v37 = vadd.f32 %v1545_v8, %v252_v34  ;;  %v521_v38 = vadd.f32 %v1543_v7, %v253_v35  ;;  %v259_v47 = vld [vmem:[%s1531_s4 + $0x1a0] sm:$0xff]  ;;  %v260_v51 = vld [vmem:[%s1531_s4 + $0x1a8] sm:$0xff] }
  0x71   : > { %757 = vst [vmem:[%s1569_s18 + $0xd0] sm:$0xff] %v501_v62  ;;  %758 = vst [vmem:[%s1569_s18 + $0xd8] sm:$0xff] %v502_v63  ;;  %v522_v42 = vadd.f32 %v1545_v8, %v254_v39  ;;  %v523_v43 = vadd.f32 %v1543_v7, %v255_v40  ;;  %v524_v44 = vadd.f32 %v1545_v8, %v256_v41  ;;  %v261_v52 = vld [vmem:[%s1531_s4 + $0x1b0] sm:$0xff]  ;;  %v262_v53 = vld [vmem:[%s1531_s4 + $0x1b8] sm:$0xff] }
  0x72   : > { %759 = vst [vmem:[%s1569_s18 + $0xe0] sm:$0xff] %v503_v0  ;;  %760 = vst [vmem:[%s1569_s18 + $0xe8] sm:$0xff] %v504_v4  ;;  %v525_v48 = vadd.f32 %v1543_v7, %v257_v45  ;;  %v526_v49 = vadd.f32 %v1545_v8, %v258_v46  ;;  %v527_v50 = vadd.f32 %v1543_v7, %v259_v47  ;;  %v263_v57 = vld [vmem:[%s1531_s4 + $0x1c0] sm:$0xff]  ;;  %v264_v58 = vld [vmem:[%s1531_s4 + $0x1c8] sm:$0xff] }
  0x73   : > { %761 = vst [vmem:[%s1569_s18 + $0xf0] sm:$0xff] %v505_v5  ;;  %762 = vst [vmem:[%s1569_s18 + $0xf8] sm:$0xff] %v506_v6  ;;  %v528_v54 = vadd.f32 %v1545_v8, %v260_v51  ;;  %v529_v55 = vadd.f32 %v1543_v7, %v261_v52  ;;  %v530_v56 = vadd.f32 %v1545_v8, %v262_v53  ;;  %v265_v59 = vld [vmem:[%s1531_s4 + $0x1d0] sm:$0xff]  ;;  %v266_v63 = vld [vmem:[%s1531_s4 + $0x1d8] sm:$0xff] }
  0x74   : > { %763 = vst [vmem:[%s1569_s18 + $0x100] sm:$0xff] %v507_v12  ;;  %764 = vst [vmem:[%s1569_s18 + $0x108] sm:$0xff] %v508_v13  ;;  %v531_v60 = vadd.f32 %v1543_v7, %v263_v57  ;;  %v532_v61 = vadd.f32 %v1545_v8, %v264_v58  ;;  %v533_v62 = vadd.f32 %v1543_v7, %v265_v59  ;;  %v267_v0 = vld [vmem:[%s1531_s4 + $0x1e0] sm:$0xff]  ;;  %v268_v1 = vld [vmem:[%s1531_s4 + $0x1e8] sm:$0xff] }
  0x75   : > { %765 = vst [vmem:[%s1569_s18 + $0x110] sm:$0xff] %v509_v14  ;;  %766 = vst [vmem:[%s1569_s18 + $0x118] sm:$0xff] %v510_v18  ;;  %v534_v2 = vadd.f32 %v1545_v8, %v266_v63  ;;  %v535_v3 = vadd.f32 %v1543_v7, %v267_v0  ;;  %v536_v4 = vadd.f32 %v1545_v8, %v268_v1  ;;  %v269_v5 = vld [vmem:[%s1531_s4 + $0x1f0] sm:$0xff]  ;;  %v270_v6 = vld [vmem:[%s1531_s4 + $0x1f8] sm:$0xff] }
  0x76   : > { %767 = vst [vmem:[%s1569_s18 + $0x120] sm:$0xff] %v511_v19  ;;  %768 = vst [vmem:[%s1569_s18 + $0x128] sm:$0xff] %v512_v20  ;;  %v271_v9 = vld [vmem:[%s1531_s4 + $0x200] sm:$0xff]  ;;  %v537_v10 = vadd.f32 %v1543_v7, %v269_v5  ;;  %v538_v11 = vadd.f32 %v1545_v8, %v270_v6  ;;  %v272_v13 = vld [vmem:[%s1531_s4 + $0x208] sm:$0xff] }
  0x77   : > { %769 = vst [vmem:[%s1569_s18 + $0x130] sm:$0xff] %v513_v24  ;;  %770 = vst [vmem:[%s1569_s18 + $0x138] sm:$0xff] %v514_v25  ;;  %v539_v12 = vadd.f32 %v1543_v7, %v271_v9  ;;  %v273_v14 = vld [vmem:[%s1531_s4 + $0x210] sm:$0xff]  ;;  %v274_v15 = vld [vmem:[%s1531_s4 + $0x218] sm:$0xff]  ;;  %v540_v16 = vadd.f32 %v1545_v8, %v272_v13 }
  0x78   : > { %771 = vst [vmem:[%s1569_s18 + $0x140] sm:$0xff] %v515_v26  ;;  %772 = vst [vmem:[%s1569_s18 + $0x148] sm:$0xff] %v516_v30  ;;  %v541_v17 = vadd.f32 %v1543_v7, %v273_v14  ;;  %v542_v18 = vadd.f32 %v1545_v8, %v274_v15  ;;  %v275_v19 = vld [vmem:[%s1531_s4 + $0x220] sm:$0xff]  ;;  %v276_v20 = vld [vmem:[%s1531_s4 + $0x228] sm:$0xff] }
  0x79   : > { %773 = vst [vmem:[%s1569_s18 + $0x150] sm:$0xff] %v517_v31  ;;  %774 = vst [vmem:[%s1569_s18 + $0x158] sm:$0xff] %v518_v32  ;;  %v277_v21 = vld [vmem:[%s1531_s4 + $0x230] sm:$0xff]  ;;  %v543_v22 = vadd.f32 %v1543_v7, %v275_v19  ;;  %v544_v23 = vadd.f32 %v1545_v8, %v276_v20  ;;  %v278_v25 = vld [vmem:[%s1531_s4 + $0x238] sm:$0xff] }
  0x7a   : > { %775 = vst [vmem:[%s1569_s18 + $0x160] sm:$0xff] %v519_v36  ;;  %776 = vst [vmem:[%s1569_s18 + $0x168] sm:$0xff] %v520_v37  ;;  %v545_v24 = vadd.f32 %v1543_v7, %v277_v21  ;;  %v279_v26 = vld [vmem:[%s1531_s4 + $0x240] sm:$0xff]  ;;  %v280_v27 = vld [vmem:[%s1531_s4 + $0x248] sm:$0xff]  ;;  %v546_v28 = vadd.f32 %v1545_v8, %v278_v25 }
  0x7b   : > { %777 = vst [vmem:[%s1569_s18 + $0x170] sm:$0xff] %v521_v38  ;;  %778 = vst [vmem:[%s1569_s18 + $0x178] sm:$0xff] %v522_v42  ;;  %v547_v29 = vadd.f32 %v1543_v7, %v279_v26  ;;  %v548_v30 = vadd.f32 %v1545_v8, %v280_v27  ;;  %v281_v31 = vld [vmem:[%s1531_s4 + $0x250] sm:$0xff]  ;;  %v282_v32 = vld [vmem:[%s1531_s4 + $0x258] sm:$0xff] }
  0x7c   : > { %779 = vst [vmem:[%s1569_s18 + $0x180] sm:$0xff] %v523_v43  ;;  %780 = vst [vmem:[%s1569_s18 + $0x188] sm:$0xff] %v524_v44  ;;  %v283_v33 = vld [vmem:[%s1531_s4 + $0x260] sm:$0xff]  ;;  %v549_v34 = vadd.f32 %v1543_v7, %v281_v31  ;;  %v550_v35 = vadd.f32 %v1545_v8, %v282_v32  ;;  %v284_v37 = vld [vmem:[%s1531_s4 + $0x268] sm:$0xff] }
  0x7d   : > { %781 = vst [vmem:[%s1569_s18 + $0x190] sm:$0xff] %v525_v48  ;;  %782 = vst [vmem:[%s1569_s18 + $0x198] sm:$0xff] %v526_v49  ;;  %v551_v36 = vadd.f32 %v1543_v7, %v283_v33  ;;  %v285_v38 = vld [vmem:[%s1531_s4 + $0x270] sm:$0xff]  ;;  %v286_v39 = vld [vmem:[%s1531_s4 + $0x278] sm:$0xff]  ;;  %v552_v40 = vadd.f32 %v1545_v8, %v284_v37 }
  0x7e   : > { %783 = vst [vmem:[%s1569_s18 + $0x1a0] sm:$0xff] %v527_v50  ;;  %784 = vst [vmem:[%s1569_s18 + $0x1a8] sm:$0xff] %v528_v54  ;;  %v553_v41 = vadd.f32 %v1543_v7, %v285_v38  ;;  %v554_v42 = vadd.f32 %v1545_v8, %v286_v39  ;;  %v287_v43 = vld [vmem:[%s1531_s4 + $0x280] sm:$0xff]  ;;  %v288_v44 = vld [vmem:[%s1531_s4 + $0x288] sm:$0xff] }
  0x7f   : > { %785 = vst [vmem:[%s1569_s18 + $0x1b0] sm:$0xff] %v529_v55  ;;  %786 = vst [vmem:[%s1569_s18 + $0x1b8] sm:$0xff] %v530_v56  ;;  %v289_v45 = vld [vmem:[%s1531_s4 + $0x290] sm:$0xff]  ;;  %v555_v46 = vadd.f32 %v1543_v7, %v287_v43  ;;  %v556_v47 = vadd.f32 %v1545_v8, %v288_v44  ;;  %v290_v49 = vld [vmem:[%s1531_s4 + $0x298] sm:$0xff] }
  0x80   : > { %787 = vst [vmem:[%s1569_s18 + $0x1c0] sm:$0xff] %v531_v60  ;;  %788 = vst [vmem:[%s1569_s18 + $0x1c8] sm:$0xff] %v532_v61  ;;  %v557_v48 = vadd.f32 %v1543_v7, %v289_v45  ;;  %v291_v50 = vld [vmem:[%s1531_s4 + $0x2a0] sm:$0xff]  ;;  %v292_v51 = vld [vmem:[%s1531_s4 + $0x2a8] sm:$0xff]  ;;  %v558_v52 = vadd.f32 %v1545_v8, %v290_v49 }
  0x81   : > { %789 = vst [vmem:[%s1569_s18 + $0x1d0] sm:$0xff] %v533_v62  ;;  %790 = vst [vmem:[%s1569_s18 + $0x1d8] sm:$0xff] %v534_v2  ;;  %v559_v53 = vadd.f32 %v1543_v7, %v291_v50  ;;  %v560_v54 = vadd.f32 %v1545_v8, %v292_v51  ;;  %v293_v55 = vld [vmem:[%s1531_s4 + $0x2b0] sm:$0xff]  ;;  %v294_v56 = vld [vmem:[%s1531_s4 + $0x2b8] sm:$0xff] }
  0x82   : > { %791 = vst [vmem:[%s1569_s18 + $0x1e0] sm:$0xff] %v535_v3  ;;  %792 = vst [vmem:[%s1569_s18 + $0x1e8] sm:$0xff] %v536_v4  ;;  %v295_v57 = vld [vmem:[%s1531_s4 + $0x2c0] sm:$0xff]  ;;  %v561_v58 = vadd.f32 %v1543_v7, %v293_v55  ;;  %v562_v59 = vadd.f32 %v1545_v8, %v294_v56  ;;  %v296_v61 = vld [vmem:[%s1531_s4 + $0x2c8] sm:$0xff] }
  0x83   : > { %793 = vst [vmem:[%s1569_s18 + $0x1f0] sm:$0xff] %v537_v10  ;;  %794 = vst [vmem:[%s1569_s18 + $0x1f8] sm:$0xff] %v538_v11  ;;  %v563_v60 = vadd.f32 %v1543_v7, %v295_v57  ;;  %v297_v62 = vld [vmem:[%s1531_s4 + $0x2d0] sm:$0xff]  ;;  %v298_v63 = vld [vmem:[%s1531_s4 + $0x2d8] sm:$0xff]  ;;  %v564_v0 = vadd.f32 %v1545_v8, %v296_v61 }
  0x84   : > { %795 = vst [vmem:[%s1569_s18 + $0x200] sm:$0xff] %v539_v12  ;;  %796 = vst [vmem:[%s1569_s18 + $0x208] sm:$0xff] %v540_v16  ;;  %v565_v1 = vadd.f32 %v1543_v7, %v297_v62  ;;  %v566_v2 = vadd.f32 %v1545_v8, %v298_v63  ;;  %v299_v3 = vld [vmem:[%s1531_s4 + $0x2e0] sm:$0xff]  ;;  %v300_v4 = vld [vmem:[%s1531_s4 + $0x2e8] sm:$0xff] }
  0x85   : > { %797 = vst [vmem:[%s1569_s18 + $0x210] sm:$0xff] %v541_v17  ;;  %798 = vst [vmem:[%s1569_s18 + $0x218] sm:$0xff] %v542_v18  ;;  %v301_v5 = vld [vmem:[%s1531_s4 + $0x2f0] sm:$0xff]  ;;  %v567_v6 = vadd.f32 %v1543_v7, %v299_v3  ;;  %v568_v9 = vadd.f32 %v1545_v8, %v300_v4  ;;  %v302_v11 = vld [vmem:[%s1531_s4 + $0x2f8] sm:$0xff] }
  0x86   : > { %799 = vst [vmem:[%s1569_s18 + $0x220] sm:$0xff] %v543_v22  ;;  %800 = vst [vmem:[%s1569_s18 + $0x228] sm:$0xff] %v544_v23  ;;  %v569_v10 = vadd.f32 %v1543_v7, %v301_v5  ;;  %v303_v12 = vld [vmem:[%s1531_s4 + $0x300] sm:$0xff]  ;;  %v304_v13 = vld [vmem:[%s1531_s4 + $0x308] sm:$0xff]  ;;  %v570_v14 = vadd.f32 %v1545_v8, %v302_v11 }
  0x87   : > { %801 = vst [vmem:[%s1569_s18 + $0x230] sm:$0xff] %v545_v24  ;;  %802 = vst [vmem:[%s1569_s18 + $0x238] sm:$0xff] %v546_v28  ;;  %v571_v15 = vadd.f32 %v1543_v7, %v303_v12  ;;  %v572_v16 = vadd.f32 %v1545_v8, %v304_v13  ;;  %v305_v17 = vld [vmem:[%s1531_s4 + $0x310] sm:$0xff]  ;;  %v306_v18 = vld [vmem:[%s1531_s4 + $0x318] sm:$0xff] }
  0x88   : > { %803 = vst [vmem:[%s1569_s18 + $0x240] sm:$0xff] %v547_v29  ;;  %804 = vst [vmem:[%s1569_s18 + $0x248] sm:$0xff] %v548_v30  ;;  %v307_v19 = vld [vmem:[%s1531_s4 + $0x320] sm:$0xff]  ;;  %v573_v20 = vadd.f32 %v1543_v7, %v305_v17  ;;  %v574_v21 = vadd.f32 %v1545_v8, %v306_v18  ;;  %v308_v23 = vld [vmem:[%s1531_s4 + $0x328] sm:$0xff] }
  0x89   : > { %805 = vst [vmem:[%s1569_s18 + $0x250] sm:$0xff] %v549_v34  ;;  %806 = vst [vmem:[%s1569_s18 + $0x258] sm:$0xff] %v550_v35  ;;  %v575_v22 = vadd.f32 %v1543_v7, %v307_v19  ;;  %v309_v24 = vld [vmem:[%s1531_s4 + $0x330] sm:$0xff]  ;;  %v310_v25 = vld [vmem:[%s1531_s4 + $0x338] sm:$0xff]  ;;  %v576_v26 = vadd.f32 %v1545_v8, %v308_v23 }
  0x8a   : > { %807 = vst [vmem:[%s1569_s18 + $0x260] sm:$0xff] %v551_v36  ;;  %808 = vst [vmem:[%s1569_s18 + $0x268] sm:$0xff] %v552_v40  ;;  %v577_v27 = vadd.f32 %v1543_v7, %v309_v24  ;;  %v578_v28 = vadd.f32 %v1545_v8, %v310_v25  ;;  %v311_v29 = vld [vmem:[%s1531_s4 + $0x340] sm:$0xff]  ;;  %v312_v30 = vld [vmem:[%s1531_s4 + $0x348] sm:$0xff] }
  0x8b   : > { %809 = vst [vmem:[%s1569_s18 + $0x270] sm:$0xff] %v553_v41  ;;  %810 = vst [vmem:[%s1569_s18 + $0x278] sm:$0xff] %v554_v42  ;;  %v313_v31 = vld [vmem:[%s1531_s4 + $0x350] sm:$0xff]  ;;  %v579_v32 = vadd.f32 %v1543_v7, %v311_v29  ;;  %v580_v33 = vadd.f32 %v1545_v8, %v312_v30  ;;  %v314_v35 = vld [vmem:[%s1531_s4 + $0x358] sm:$0xff] }
  0x8c   : > { %811 = vst [vmem:[%s1569_s18 + $0x280] sm:$0xff] %v555_v46  ;;  %812 = vst [vmem:[%s1569_s18 + $0x288] sm:$0xff] %v556_v47  ;;  %v581_v34 = vadd.f32 %v1543_v7, %v313_v31  ;;  %v315_v36 = vld [vmem:[%s1531_s4 + $0x360] sm:$0xff]  ;;  %v316_v37 = vld [vmem:[%s1531_s4 + $0x368] sm:$0xff]  ;;  %v582_v38 = vadd.f32 %v1545_v8, %v314_v35 }
  0x8d   : > { %813 = vst [vmem:[%s1569_s18 + $0x290] sm:$0xff] %v557_v48  ;;  %814 = vst [vmem:[%s1569_s18 + $0x298] sm:$0xff] %v558_v52  ;;  %v583_v39 = vadd.f32 %v1543_v7, %v315_v36  ;;  %v584_v40 = vadd.f32 %v1545_v8, %v316_v37  ;;  %v317_v41 = vld [vmem:[%s1531_s4 + $0x370] sm:$0xff]  ;;  %v318_v42 = vld [vmem:[%s1531_s4 + $0x378] sm:$0xff] }
  0x8e   : > { %815 = vst [vmem:[%s1569_s18 + $0x2a0] sm:$0xff] %v559_v53  ;;  %816 = vst [vmem:[%s1569_s18 + $0x2a8] sm:$0xff] %v560_v54  ;;  %v319_v43 = vld [vmem:[%s1531_s4 + $0x380] sm:$0xff]  ;;  %v585_v44 = vadd.f32 %v1543_v7, %v317_v41  ;;  %v586_v45 = vadd.f32 %v1545_v8, %v318_v42  ;;  %v320_v47 = vld [vmem:[%s1531_s4 + $0x388] sm:$0xff] }
  0x8f   : > { %817 = vst [vmem:[%s1569_s18 + $0x2b0] sm:$0xff] %v561_v58  ;;  %818 = vst [vmem:[%s1569_s18 + $0x2b8] sm:$0xff] %v562_v59  ;;  %v587_v46 = vadd.f32 %v1543_v7, %v319_v43  ;;  %v321_v48 = vld [vmem:[%s1531_s4 + $0x390] sm:$0xff]  ;;  %v322_v49 = vld [vmem:[%s1531_s4 + $0x398] sm:$0xff]  ;;  %v588_v50 = vadd.f32 %v1545_v8, %v320_v47 }
  0x90   : > { %819 = vst [vmem:[%s1569_s18 + $0x2c0] sm:$0xff] %v563_v60  ;;  %820 = vst [vmem:[%s1569_s18 + $0x2c8] sm:$0xff] %v564_v0  ;;  %v589_v51 = vadd.f32 %v1543_v7, %v321_v48  ;;  %v590_v52 = vadd.f32 %v1545_v8, %v322_v49  ;;  %v323_v53 = vld [vmem:[%s1531_s4 + $0x3a0] sm:$0xff]  ;;  %v324_v54 = vld [vmem:[%s1531_s4 + $0x3a8] sm:$0xff] }
  0x91   : > { %821 = vst [vmem:[%s1569_s18 + $0x2d0] sm:$0xff] %v565_v1  ;;  %822 = vst [vmem:[%s1569_s18 + $0x2d8] sm:$0xff] %v566_v2  ;;  %v325_v55 = vld [vmem:[%s1531_s4 + $0x3b0] sm:$0xff]  ;;  %v591_v56 = vadd.f32 %v1543_v7, %v323_v53  ;;  %v592_v57 = vadd.f32 %v1545_v8, %v324_v54  ;;  %v326_v59 = vld [vmem:[%s1531_s4 + $0x3b8] sm:$0xff] }
  0x92   : > { %823 = vst [vmem:[%s1569_s18 + $0x2e0] sm:$0xff] %v567_v6  ;;  %824 = vst [vmem:[%s1569_s18 + $0x2e8] sm:$0xff] %v568_v9  ;;  %v593_v58 = vadd.f32 %v1543_v7, %v325_v55  ;;  %v327_v60 = vld [vmem:[%s1531_s4 + $0x3c0] sm:$0xff]  ;;  %v328_v61 = vld [vmem:[%s1531_s4 + $0x3c8] sm:$0xff]  ;;  %v594_v62 = vadd.f32 %v1545_v8, %v326_v59 }
  0x93   : > { %825 = vst [vmem:[%s1569_s18 + $0x2f0] sm:$0xff] %v569_v10  ;;  %826 = vst [vmem:[%s1569_s18 + $0x2f8] sm:$0xff] %v570_v14  ;;  %v595_v63 = vadd.f32 %v1543_v7, %v327_v60  ;;  %v596_v0 = vadd.f32 %v1545_v8, %v328_v61  ;;  %v329_v1 = vld [vmem:[%s1531_s4 + $0x3d0] sm:$0xff]  ;;  %v330_v2 = vld [vmem:[%s1531_s4 + $0x3d8] sm:$0xff] }
  0x94   : > { %827 = vst [vmem:[%s1569_s18 + $0x300] sm:$0xff] %v571_v15  ;;  %828 = vst [vmem:[%s1569_s18 + $0x308] sm:$0xff] %v572_v16  ;;  %v331_v3 = vld [vmem:[%s1531_s4 + $0x3e0] sm:$0xff]  ;;  %v597_v4 = vadd.f32 %v1543_v7, %v329_v1  ;;  %v598_v5 = vadd.f32 %v1545_v8, %v330_v2  ;;  %v332_v9 = vld [vmem:[%s1531_s4 + $0x3e8] sm:$0xff] }
  0x95   : > { %829 = vst [vmem:[%s1569_s18 + $0x310] sm:$0xff] %v573_v20  ;;  %830 = vst [vmem:[%s1569_s18 + $0x318] sm:$0xff] %v574_v21  ;;  %v599_v6 = vadd.f32 %v1543_v7, %v331_v3  ;;  %v333_v10 = vld [vmem:[%s1531_s4 + $0x3f0] sm:$0xff]  ;;  %v334_v11 = vld [vmem:[%s1531_s4 + $0x3f8] sm:$0xff]  ;;  %v600_v12 = vadd.f32 %v1545_v8, %v332_v9 }
  0x96   : > { %831 = vst [vmem:[%s1569_s18 + $0x320] sm:$0xff] %v575_v22  ;;  %832 = vst [vmem:[%s1569_s18 + $0x328] sm:$0xff] %v576_v26  ;;  %v601_v13 = vadd.f32 %v1543_v7, %v333_v10  ;;  %v602_v14 = vadd.f32 %v1545_v8, %v334_v11  ;;  %v335_v15 = vld [vmem:[%s1531_s4 + $0x400] sm:$0xff]  ;;  %v336_v16 = vld [vmem:[%s1531_s4 + $0x408] sm:$0xff] }
  0x97   : > { %833 = vst [vmem:[%s1569_s18 + $0x330] sm:$0xff] %v577_v27  ;;  %834 = vst [vmem:[%s1569_s18 + $0x338] sm:$0xff] %v578_v28  ;;  %v337_v17 = vld [vmem:[%s1531_s4 + $0x410] sm:$0xff]  ;;  %v603_v18 = vadd.f32 %v1543_v7, %v335_v15  ;;  %v604_v19 = vadd.f32 %v1545_v8, %v336_v16  ;;  %v338_v21 = vld [vmem:[%s1531_s4 + $0x418] sm:$0xff] }
  0x98   : > { %835 = vst [vmem:[%s1569_s18 + $0x340] sm:$0xff] %v579_v32  ;;  %836 = vst [vmem:[%s1569_s18 + $0x348] sm:$0xff] %v580_v33  ;;  %v605_v20 = vadd.f32 %v1543_v7, %v337_v17  ;;  %v339_v22 = vld [vmem:[%s1531_s4 + $0x420] sm:$0xff]  ;;  %v340_v23 = vld [vmem:[%s1531_s4 + $0x428] sm:$0xff]  ;;  %v606_v24 = vadd.f32 %v1545_v8, %v338_v21 }
  0x99   : > { %837 = vst [vmem:[%s1569_s18 + $0x350] sm:$0xff] %v581_v34  ;;  %838 = vst [vmem:[%s1569_s18 + $0x358] sm:$0xff] %v582_v38  ;;  %v607_v25 = vadd.f32 %v1543_v7, %v339_v22  ;;  %v608_v26 = vadd.f32 %v1545_v8, %v340_v23  ;;  %v341_v27 = vld [vmem:[%s1531_s4 + $0x430] sm:$0xff]  ;;  %v342_v28 = vld [vmem:[%s1531_s4 + $0x438] sm:$0xff] }
  0x9a   : > { %839 = vst [vmem:[%s1569_s18 + $0x360] sm:$0xff] %v583_v39  ;;  %840 = vst [vmem:[%s1569_s18 + $0x368] sm:$0xff] %v584_v40  ;;  %v343_v29 = vld [vmem:[%s1531_s4 + $0x440] sm:$0xff]  ;;  %v609_v30 = vadd.f32 %v1543_v7, %v341_v27  ;;  %v610_v31 = vadd.f32 %v1545_v8, %v342_v28  ;;  %v344_v33 = vld [vmem:[%s1531_s4 + $0x448] sm:$0xff] }
  0x9b   : > { %841 = vst [vmem:[%s1569_s18 + $0x370] sm:$0xff] %v585_v44  ;;  %842 = vst [vmem:[%s1569_s18 + $0x378] sm:$0xff] %v586_v45  ;;  %v611_v32 = vadd.f32 %v1543_v7, %v343_v29  ;;  %v345_v34 = vld [vmem:[%s1531_s4 + $0x450] sm:$0xff]  ;;  %v346_v35 = vld [vmem:[%s1531_s4 + $0x458] sm:$0xff]  ;;  %v612_v36 = vadd.f32 %v1545_v8, %v344_v33 }
  0x9c   : > { %843 = vst [vmem:[%s1569_s18 + $0x380] sm:$0xff] %v587_v46  ;;  %844 = vst [vmem:[%s1569_s18 + $0x388] sm:$0xff] %v588_v50  ;;  %v613_v37 = vadd.f32 %v1543_v7, %v345_v34  ;;  %v614_v38 = vadd.f32 %v1545_v8, %v346_v35  ;;  %v347_v39 = vld [vmem:[%s1531_s4 + $0x460] sm:$0xff]  ;;  %v348_v40 = vld [vmem:[%s1531_s4 + $0x468] sm:$0xff] }
  0x9d   : > { %845 = vst [vmem:[%s1569_s18 + $0x390] sm:$0xff] %v589_v51  ;;  %846 = vst [vmem:[%s1569_s18 + $0x398] sm:$0xff] %v590_v52  ;;  %v349_v41 = vld [vmem:[%s1531_s4 + $0x470] sm:$0xff]  ;;  %v615_v42 = vadd.f32 %v1543_v7, %v347_v39  ;;  %v616_v43 = vadd.f32 %v1545_v8, %v348_v40  ;;  %v350_v45 = vld [vmem:[%s1531_s4 + $0x478] sm:$0xff] }
  0x9e   : > { %847 = vst [vmem:[%s1569_s18 + $0x3a0] sm:$0xff] %v591_v56  ;;  %848 = vst [vmem:[%s1569_s18 + $0x3a8] sm:$0xff] %v592_v57  ;;  %v617_v44 = vadd.f32 %v1543_v7, %v349_v41  ;;  %v351_v46 = vld [vmem:[%s1531_s4 + $0x480] sm:$0xff]  ;;  %v352_v47 = vld [vmem:[%s1531_s4 + $0x488] sm:$0xff]  ;;  %v618_v48 = vadd.f32 %v1545_v8, %v350_v45 }
  0x9f   : > { %849 = vst [vmem:[%s1569_s18 + $0x3b0] sm:$0xff] %v593_v58  ;;  %850 = vst [vmem:[%s1569_s18 + $0x3b8] sm:$0xff] %v594_v62  ;;  %v619_v49 = vadd.f32 %v1543_v7, %v351_v46  ;;  %v620_v50 = vadd.f32 %v1545_v8, %v352_v47  ;;  %v353_v51 = vld [vmem:[%s1531_s4 + $0x490] sm:$0xff]  ;;  %v354_v52 = vld [vmem:[%s1531_s4 + $0x498] sm:$0xff] }
  0xa0   : > { %851 = vst [vmem:[%s1569_s18 + $0x3c0] sm:$0xff] %v595_v63  ;;  %852 = vst [vmem:[%s1569_s18 + $0x3c8] sm:$0xff] %v596_v0  ;;  %v355_v53 = vld [vmem:[%s1531_s4 + $0x4a0] sm:$0xff]  ;;  %v621_v54 = vadd.f32 %v1543_v7, %v353_v51  ;;  %v622_v55 = vadd.f32 %v1545_v8, %v354_v52  ;;  %v356_v57 = vld [vmem:[%s1531_s4 + $0x4a8] sm:$0xff] }
  0xa1   : > { %853 = vst [vmem:[%s1569_s18 + $0x3d0] sm:$0xff] %v597_v4  ;;  %854 = vst [vmem:[%s1569_s18 + $0x3d8] sm:$0xff] %v598_v5  ;;  %v623_v56 = vadd.f32 %v1543_v7, %v355_v53  ;;  %v357_v58 = vld [vmem:[%s1531_s4 + $0x4b0] sm:$0xff]  ;;  %v358_v59 = vld [vmem:[%s1531_s4 + $0x4b8] sm:$0xff]  ;;  %v624_v60 = vadd.f32 %v1545_v8, %v356_v57 }
  0xa2   : > { %855 = vst [vmem:[%s1569_s18 + $0x3e0] sm:$0xff] %v599_v6  ;;  %856 = vst [vmem:[%s1569_s18 + $0x3e8] sm:$0xff] %v600_v12  ;;  %v625_v61 = vadd.f32 %v1543_v7, %v357_v58  ;;  %v626_v62 = vadd.f32 %v1545_v8, %v358_v59  ;;  %v359_v63 = vld [vmem:[%s1531_s4 + $0x4c0] sm:$0xff]  ;;  %v360_v0 = vld [vmem:[%s1531_s4 + $0x4c8] sm:$0xff] }
  0xa3   : > { %857 = vst [vmem:[%s1569_s18 + $0x3f0] sm:$0xff] %v601_v13  ;;  %858 = vst [vmem:[%s1569_s18 + $0x3f8] sm:$0xff] %v602_v14  ;;  %v361_v1 = vld [vmem:[%s1531_s4 + $0x4d0] sm:$0xff]  ;;  %v627_v2 = vadd.f32 %v1543_v7, %v359_v63  ;;  %v628_v3 = vadd.f32 %v1545_v8, %v360_v0  ;;  %v362_v5 = vld [vmem:[%s1531_s4 + $0x4d8] sm:$0xff] }
  0xa4   : > { %859 = vst [vmem:[%s1569_s18 + $0x400] sm:$0xff] %v603_v18  ;;  %860 = vst [vmem:[%s1569_s18 + $0x408] sm:$0xff] %v604_v19  ;;  %v629_v4 = vadd.f32 %v1543_v7, %v361_v1  ;;  %v363_v6 = vld [vmem:[%s1531_s4 + $0x4e0] sm:$0xff]  ;;  %v364_v9 = vld [vmem:[%s1531_s4 + $0x4e8] sm:$0xff]  ;;  %v630_v10 = vadd.f32 %v1545_v8, %v362_v5 }
  0xa5   : > { %861 = vst [vmem:[%s1569_s18 + $0x410] sm:$0xff] %v605_v20  ;;  %862 = vst [vmem:[%s1569_s18 + $0x418] sm:$0xff] %v606_v24  ;;  %v631_v11 = vadd.f32 %v1543_v7, %v363_v6  ;;  %v632_v12 = vadd.f32 %v1545_v8, %v364_v9  ;;  %v365_v13 = vld [vmem:[%s1531_s4 + $0x4f0] sm:$0xff]  ;;  %v366_v14 = vld [vmem:[%s1531_s4 + $0x4f8] sm:$0xff] }
  0xa6   : > { %863 = vst [vmem:[%s1569_s18 + $0x420] sm:$0xff] %v607_v25  ;;  %864 = vst [vmem:[%s1569_s18 + $0x428] sm:$0xff] %v608_v26  ;;  %v367_v15 = vld [vmem:[%s1531_s4 + $0x500] sm:$0xff]  ;;  %v633_v16 = vadd.f32 %v1543_v7, %v365_v13  ;;  %v634_v17 = vadd.f32 %v1545_v8, %v366_v14  ;;  %v368_v19 = vld [vmem:[%s1531_s4 + $0x508] sm:$0xff] }
  0xa7   : > { %865 = vst [vmem:[%s1569_s18 + $0x430] sm:$0xff] %v609_v30  ;;  %866 = vst [vmem:[%s1569_s18 + $0x438] sm:$0xff] %v610_v31  ;;  %v635_v18 = vadd.f32 %v1543_v7, %v367_v15  ;;  %v369_v20 = vld [vmem:[%s1531_s4 + $0x510] sm:$0xff]  ;;  %v370_v21 = vld [vmem:[%s1531_s4 + $0x518] sm:$0xff]  ;;  %v636_v22 = vadd.f32 %v1545_v8, %v368_v19 }
  0xa8   : > { %867 = vst [vmem:[%s1569_s18 + $0x440] sm:$0xff] %v611_v32  ;;  %868 = vst [vmem:[%s1569_s18 + $0x448] sm:$0xff] %v612_v36  ;;  %v637_v23 = vadd.f32 %v1543_v7, %v369_v20  ;;  %v638_v24 = vadd.f32 %v1545_v8, %v370_v21  ;;  %v371_v25 = vld [vmem:[%s1531_s4 + $0x520] sm:$0xff]  ;;  %v372_v26 = vld [vmem:[%s1531_s4 + $0x528] sm:$0xff] }
  0xa9   : > { %869 = vst [vmem:[%s1569_s18 + $0x450] sm:$0xff] %v613_v37  ;;  %870 = vst [vmem:[%s1569_s18 + $0x458] sm:$0xff] %v614_v38  ;;  %v373_v27 = vld [vmem:[%s1531_s4 + $0x530] sm:$0xff]  ;;  %v639_v28 = vadd.f32 %v1543_v7, %v371_v25  ;;  %v640_v29 = vadd.f32 %v1545_v8, %v372_v26  ;;  %v374_v31 = vld [vmem:[%s1531_s4 + $0x538] sm:$0xff] }
  0xaa   : > { %871 = vst [vmem:[%s1569_s18 + $0x460] sm:$0xff] %v615_v42  ;;  %872 = vst [vmem:[%s1569_s18 + $0x468] sm:$0xff] %v616_v43  ;;  %v641_v30 = vadd.f32 %v1543_v7, %v373_v27  ;;  %v375_v32 = vld [vmem:[%s1531_s4 + $0x540] sm:$0xff]  ;;  %v376_v33 = vld [vmem:[%s1531_s4 + $0x548] sm:$0xff]  ;;  %v642_v34 = vadd.f32 %v1545_v8, %v374_v31 }
  0xab   : > { %873 = vst [vmem:[%s1569_s18 + $0x470] sm:$0xff] %v617_v44  ;;  %874 = vst [vmem:[%s1569_s18 + $0x478] sm:$0xff] %v618_v48  ;;  %v643_v35 = vadd.f32 %v1543_v7, %v375_v32  ;;  %v644_v36 = vadd.f32 %v1545_v8, %v376_v33  ;;  %v377_v37 = vld [vmem:[%s1531_s4 + $0x550] sm:$0xff]  ;;  %v378_v38 = vld [vmem:[%s1531_s4 + $0x558] sm:$0xff] }
  0xac   : > { %875 = vst [vmem:[%s1569_s18 + $0x480] sm:$0xff] %v619_v49  ;;  %876 = vst [vmem:[%s1569_s18 + $0x488] sm:$0xff] %v620_v50  ;;  %v379_v39 = vld [vmem:[%s1531_s4 + $0x560] sm:$0xff]  ;;  %v645_v40 = vadd.f32 %v1543_v7, %v377_v37  ;;  %v646_v41 = vadd.f32 %v1545_v8, %v378_v38  ;;  %v380_v43 = vld [vmem:[%s1531_s4 + $0x568] sm:$0xff] }
  0xad   : > { %877 = vst [vmem:[%s1569_s18 + $0x490] sm:$0xff] %v621_v54  ;;  %878 = vst [vmem:[%s1569_s18 + $0x498] sm:$0xff] %v622_v55  ;;  %v647_v42 = vadd.f32 %v1543_v7, %v379_v39  ;;  %v381_v44 = vld [vmem:[%s1531_s4 + $0x570] sm:$0xff]  ;;  %v382_v45 = vld [vmem:[%s1531_s4 + $0x578] sm:$0xff]  ;;  %v648_v46 = vadd.f32 %v1545_v8, %v380_v43 }
  0xae   : > { %879 = vst [vmem:[%s1569_s18 + $0x4a0] sm:$0xff] %v623_v56  ;;  %880 = vst [vmem:[%s1569_s18 + $0x4a8] sm:$0xff] %v624_v60  ;;  %v649_v47 = vadd.f32 %v1543_v7, %v381_v44  ;;  %v650_v48 = vadd.f32 %v1545_v8, %v382_v45  ;;  %v383_v49 = vld [vmem:[%s1531_s4 + $0x580] sm:$0xff]  ;;  %v384_v50 = vld [vmem:[%s1531_s4 + $0x588] sm:$0xff] }
  0xaf   : > { %881 = vst [vmem:[%s1569_s18 + $0x4b0] sm:$0xff] %v625_v61  ;;  %882 = vst [vmem:[%s1569_s18 + $0x4b8] sm:$0xff] %v626_v62  ;;  %v385_v51 = vld [vmem:[%s1531_s4 + $0x590] sm:$0xff]  ;;  %v651_v52 = vadd.f32 %v1543_v7, %v383_v49  ;;  %v652_v53 = vadd.f32 %v1545_v8, %v384_v50  ;;  %v386_v55 = vld [vmem:[%s1531_s4 + $0x598] sm:$0xff] }
  0xb0   : > { %883 = vst [vmem:[%s1569_s18 + $0x4c0] sm:$0xff] %v627_v2  ;;  %884 = vst [vmem:[%s1569_s18 + $0x4c8] sm:$0xff] %v628_v3  ;;  %v653_v54 = vadd.f32 %v1543_v7, %v385_v51  ;;  %v387_v56 = vld [vmem:[%s1531_s4 + $0x5a0] sm:$0xff]  ;;  %v388_v57 = vld [vmem:[%s1531_s4 + $0x5a8] sm:$0xff]  ;;  %v654_v58 = vadd.f32 %v1545_v8, %v386_v55 }
  0xb1   : > { %885 = vst [vmem:[%s1569_s18 + $0x4d0] sm:$0xff] %v629_v4  ;;  %886 = vst [vmem:[%s1569_s18 + $0x4d8] sm:$0xff] %v630_v10  ;;  %v655_v59 = vadd.f32 %v1543_v7, %v387_v56  ;;  %v656_v60 = vadd.f32 %v1545_v8, %v388_v57  ;;  %v389_v61 = vld [vmem:[%s1531_s4 + $0x5b0] sm:$0xff]  ;;  %v390_v62 = vld [vmem:[%s1531_s4 + $0x5b8] sm:$0xff] }
  0xb2   : > { %887 = vst [vmem:[%s1569_s18 + $0x4e0] sm:$0xff] %v631_v11  ;;  %888 = vst [vmem:[%s1569_s18 + $0x4e8] sm:$0xff] %v632_v12  ;;  %v391_v63 = vld [vmem:[%s1531_s4 + $0x5c0] sm:$0xff]  ;;  %v657_v0 = vadd.f32 %v1543_v7, %v389_v61  ;;  %v658_v1 = vadd.f32 %v1545_v8, %v390_v62  ;;  %v392_v3 = vld [vmem:[%s1531_s4 + $0x5c8] sm:$0xff] }
  0xb3   : > { %889 = vst [vmem:[%s1569_s18 + $0x4f0] sm:$0xff] %v633_v16  ;;  %890 = vst [vmem:[%s1569_s18 + $0x4f8] sm:$0xff] %v634_v17  ;;  %v659_v2 = vadd.f32 %v1543_v7, %v391_v63  ;;  %v393_v4 = vld [vmem:[%s1531_s4 + $0x5d0] sm:$0xff]  ;;  %v394_v5 = vld [vmem:[%s1531_s4 + $0x5d8] sm:$0xff]  ;;  %v660_v6 = vadd.f32 %v1545_v8, %v392_v3 }
  0xb4   : > { %891 = vst [vmem:[%s1569_s18 + $0x500] sm:$0xff] %v635_v18  ;;  %892 = vst [vmem:[%s1569_s18 + $0x508] sm:$0xff] %v636_v22  ;;  %v661_v9 = vadd.f32 %v1543_v7, %v393_v4  ;;  %v662_v10 = vadd.f32 %v1545_v8, %v394_v5  ;;  %v395_v11 = vld [vmem:[%s1531_s4 + $0x5e0] sm:$0xff]  ;;  %v396_v12 = vld [vmem:[%s1531_s4 + $0x5e8] sm:$0xff] }
  0xb5   : > { %893 = vst [vmem:[%s1569_s18 + $0x510] sm:$0xff] %v637_v23  ;;  %894 = vst [vmem:[%s1569_s18 + $0x518] sm:$0xff] %v638_v24  ;;  %v397_v13 = vld [vmem:[%s1531_s4 + $0x5f0] sm:$0xff]  ;;  %v663_v14 = vadd.f32 %v1543_v7, %v395_v11  ;;  %v664_v15 = vadd.f32 %v1545_v8, %v396_v12  ;;  %v398_v17 = vld [vmem:[%s1531_s4 + $0x5f8] sm:$0xff] }
  0xb6   : > { %895 = vst [vmem:[%s1569_s18 + $0x520] sm:$0xff] %v639_v28  ;;  %896 = vst [vmem:[%s1569_s18 + $0x528] sm:$0xff] %v640_v29  ;;  %v665_v16 = vadd.f32 %v1543_v7, %v397_v13  ;;  %v399_v18 = vld [vmem:[%s1531_s4 + $0x600] sm:$0xff]  ;;  %v400_v19 = vld [vmem:[%s1531_s4 + $0x608] sm:$0xff]  ;;  %v666_v20 = vadd.f32 %v1545_v8, %v398_v17 }
  0xb7   : > { %897 = vst [vmem:[%s1569_s18 + $0x530] sm:$0xff] %v641_v30  ;;  %898 = vst [vmem:[%s1569_s18 + $0x538] sm:$0xff] %v642_v34  ;;  %v667_v21 = vadd.f32 %v1543_v7, %v399_v18  ;;  %v668_v22 = vadd.f32 %v1545_v8, %v400_v19  ;;  %v401_v23 = vld [vmem:[%s1531_s4 + $0x610] sm:$0xff]  ;;  %v402_v24 = vld [vmem:[%s1531_s4 + $0x618] sm:$0xff] }
  0xb8   : > { %899 = vst [vmem:[%s1569_s18 + $0x540] sm:$0xff] %v643_v35  ;;  %900 = vst [vmem:[%s1569_s18 + $0x548] sm:$0xff] %v644_v36  ;;  %v403_v25 = vld [vmem:[%s1531_s4 + $0x620] sm:$0xff]  ;;  %v669_v26 = vadd.f32 %v1543_v7, %v401_v23  ;;  %v670_v27 = vadd.f32 %v1545_v8, %v402_v24  ;;  %v404_v29 = vld [vmem:[%s1531_s4 + $0x628] sm:$0xff] }
  0xb9   : > { %901 = vst [vmem:[%s1569_s18 + $0x550] sm:$0xff] %v645_v40  ;;  %902 = vst [vmem:[%s1569_s18 + $0x558] sm:$0xff] %v646_v41  ;;  %v671_v28 = vadd.f32 %v1543_v7, %v403_v25  ;;  %v405_v30 = vld [vmem:[%s1531_s4 + $0x630] sm:$0xff]  ;;  %v406_v31 = vld [vmem:[%s1531_s4 + $0x638] sm:$0xff]  ;;  %v672_v32 = vadd.f32 %v1545_v8, %v404_v29 }
  0xba   : > { %903 = vst [vmem:[%s1569_s18 + $0x560] sm:$0xff] %v647_v42  ;;  %904 = vst [vmem:[%s1569_s18 + $0x568] sm:$0xff] %v648_v46  ;;  %v673_v33 = vadd.f32 %v1543_v7, %v405_v30  ;;  %v674_v34 = vadd.f32 %v1545_v8, %v406_v31  ;;  %v407_v35 = vld [vmem:[%s1531_s4 + $0x640] sm:$0xff]  ;;  %v408_v36 = vld [vmem:[%s1531_s4 + $0x648] sm:$0xff] }
  0xbb   : > { %905 = vst [vmem:[%s1569_s18 + $0x570] sm:$0xff] %v649_v47  ;;  %906 = vst [vmem:[%s1569_s18 + $0x578] sm:$0xff] %v650_v48  ;;  %v409_v37 = vld [vmem:[%s1531_s4 + $0x650] sm:$0xff]  ;;  %v675_v38 = vadd.f32 %v1543_v7, %v407_v35  ;;  %v676_v39 = vadd.f32 %v1545_v8, %v408_v36  ;;  %v410_v41 = vld [vmem:[%s1531_s4 + $0x658] sm:$0xff] }
  0xbc   : > { %907 = vst [vmem:[%s1569_s18 + $0x580] sm:$0xff] %v651_v52  ;;  %908 = vst [vmem:[%s1569_s18 + $0x588] sm:$0xff] %v652_v53  ;;  %v677_v40 = vadd.f32 %v1543_v7, %v409_v37  ;;  %v411_v42 = vld [vmem:[%s1531_s4 + $0x660] sm:$0xff]  ;;  %v412_v43 = vld [vmem:[%s1531_s4 + $0x668] sm:$0xff]  ;;  %v678_v44 = vadd.f32 %v1545_v8, %v410_v41 }
  0xbd   : > { %909 = vst [vmem:[%s1569_s18 + $0x590] sm:$0xff] %v653_v54  ;;  %910 = vst [vmem:[%s1569_s18 + $0x598] sm:$0xff] %v654_v58  ;;  %v679_v45 = vadd.f32 %v1543_v7, %v411_v42  ;;  %v680_v46 = vadd.f32 %v1545_v8, %v412_v43  ;;  %v413_v47 = vld [vmem:[%s1531_s4 + $0x670] sm:$0xff]  ;;  %v414_v48 = vld [vmem:[%s1531_s4 + $0x678] sm:$0xff] }
  0xbe   : > { %911 = vst [vmem:[%s1569_s18 + $0x5a0] sm:$0xff] %v655_v59  ;;  %912 = vst [vmem:[%s1569_s18 + $0x5a8] sm:$0xff] %v656_v60  ;;  %v415_v49 = vld [vmem:[%s1531_s4 + $0x680] sm:$0xff]  ;;  %v681_v50 = vadd.f32 %v1543_v7, %v413_v47  ;;  %v682_v51 = vadd.f32 %v1545_v8, %v414_v48  ;;  %v416_v53 = vld [vmem:[%s1531_s4 + $0x688] sm:$0xff] }
  0xbf   : > { %913 = vst [vmem:[%s1569_s18 + $0x5b0] sm:$0xff] %v657_v0  ;;  %914 = vst [vmem:[%s1569_s18 + $0x5b8] sm:$0xff] %v658_v1  ;;  %v683_v52 = vadd.f32 %v1543_v7, %v415_v49  ;;  %v417_v54 = vld [vmem:[%s1531_s4 + $0x690] sm:$0xff]  ;;  %v418_v55 = vld [vmem:[%s1531_s4 + $0x698] sm:$0xff]  ;;  %v684_v56 = vadd.f32 %v1545_v8, %v416_v53 }
  0xc0   : > { %915 = vst [vmem:[%s1569_s18 + $0x5c0] sm:$0xff] %v659_v2  ;;  %916 = vst [vmem:[%s1569_s18 + $0x5c8] sm:$0xff] %v660_v6  ;;  %v685_v57 = vadd.f32 %v1543_v7, %v417_v54  ;;  %v686_v58 = vadd.f32 %v1545_v8, %v418_v55  ;;  %v419_v59 = vld [vmem:[%s1531_s4 + $0x6a0] sm:$0xff]  ;;  %v420_v60 = vld [vmem:[%s1531_s4 + $0x6a8] sm:$0xff] }
  0xc1   : > { %917 = vst [vmem:[%s1569_s18 + $0x5d0] sm:$0xff] %v661_v9  ;;  %918 = vst [vmem:[%s1569_s18 + $0x5d8] sm:$0xff] %v662_v10  ;;  %v421_v61 = vld [vmem:[%s1531_s4 + $0x6b0] sm:$0xff]  ;;  %v687_v62 = vadd.f32 %v1543_v7, %v419_v59  ;;  %v688_v63 = vadd.f32 %v1545_v8, %v420_v60  ;;  %v422_v1 = vld [vmem:[%s1531_s4 + $0x6b8] sm:$0xff] }
  0xc2   : > { %919 = vst [vmem:[%s1569_s18 + $0x5e0] sm:$0xff] %v663_v14  ;;  %920 = vst [vmem:[%s1569_s18 + $0x5e8] sm:$0xff] %v664_v15  ;;  %v689_v0 = vadd.f32 %v1543_v7, %v421_v61  ;;  %v423_v2 = vld [vmem:[%s1531_s4 + $0x6c0] sm:$0xff]  ;;  %v424_v3 = vld [vmem:[%s1531_s4 + $0x6c8] sm:$0xff]  ;;  %v690_v4 = vadd.f32 %v1545_v8, %v422_v1 }
  0xc3   : > { %921 = vst [vmem:[%s1569_s18 + $0x5f0] sm:$0xff] %v665_v16  ;;  %922 = vst [vmem:[%s1569_s18 + $0x5f8] sm:$0xff] %v666_v20  ;;  %v691_v5 = vadd.f32 %v1543_v7, %v423_v2  ;;  %v692_v6 = vadd.f32 %v1545_v8, %v424_v3  ;;  %v425_v9 = vld [vmem:[%s1531_s4 + $0x6d0] sm:$0xff]  ;;  %v426_v10 = vld [vmem:[%s1531_s4 + $0x6d8] sm:$0xff] }
  0xc4   : > { %923 = vst [vmem:[%s1569_s18 + $0x600] sm:$0xff] %v667_v21  ;;  %924 = vst [vmem:[%s1569_s18 + $0x608] sm:$0xff] %v668_v22  ;;  %v427_v11 = vld [vmem:[%s1531_s4 + $0x6e0] sm:$0xff]  ;;  %v693_v12 = vadd.f32 %v1543_v7, %v425_v9  ;;  %v694_v13 = vadd.f32 %v1545_v8, %v426_v10  ;;  %v428_v15 = vld [vmem:[%s1531_s4 + $0x6e8] sm:$0xff] }
  0xc5   : > { %925 = vst [vmem:[%s1569_s18 + $0x610] sm:$0xff] %v669_v26  ;;  %926 = vst [vmem:[%s1569_s18 + $0x618] sm:$0xff] %v670_v27  ;;  %v695_v14 = vadd.f32 %v1543_v7, %v427_v11  ;;  %v429_v16 = vld [vmem:[%s1531_s4 + $0x6f0] sm:$0xff]  ;;  %v430_v17 = vld [vmem:[%s1531_s4 + $0x6f8] sm:$0xff]  ;;  %v696_v18 = vadd.f32 %v1545_v8, %v428_v15 }
  0xc6   : > { %927 = vst [vmem:[%s1569_s18 + $0x620] sm:$0xff] %v671_v28  ;;  %928 = vst [vmem:[%s1569_s18 + $0x628] sm:$0xff] %v672_v32  ;;  %v697_v19 = vadd.f32 %v1543_v7, %v429_v16  ;;  %v698_v20 = vadd.f32 %v1545_v8, %v430_v17  ;;  %v431_v21 = vld [vmem:[%s1531_s4 + $0x700] sm:$0xff]  ;;  %v432_v22 = vld [vmem:[%s1531_s4 + $0x708] sm:$0xff] }
  0xc7   : > { %929 = vst [vmem:[%s1569_s18 + $0x630] sm:$0xff] %v673_v33  ;;  %930 = vst [vmem:[%s1569_s18 + $0x638] sm:$0xff] %v674_v34  ;;  %v433_v23 = vld [vmem:[%s1531_s4 + $0x710] sm:$0xff]  ;;  %v699_v24 = vadd.f32 %v1543_v7, %v431_v21  ;;  %v700_v25 = vadd.f32 %v1545_v8, %v432_v22  ;;  %v434_v27 = vld [vmem:[%s1531_s4 + $0x718] sm:$0xff] }
  0xc8   : > { %931 = vst [vmem:[%s1569_s18 + $0x640] sm:$0xff] %v675_v38  ;;  %932 = vst [vmem:[%s1569_s18 + $0x648] sm:$0xff] %v676_v39  ;;  %v701_v26 = vadd.f32 %v1543_v7, %v433_v23  ;;  %v435_v28 = vld [vmem:[%s1531_s4 + $0x720] sm:$0xff]  ;;  %v436_v29 = vld [vmem:[%s1531_s4 + $0x728] sm:$0xff]  ;;  %v702_v30 = vadd.f32 %v1545_v8, %v434_v27 }
  0xc9   : > { %933 = vst [vmem:[%s1569_s18 + $0x650] sm:$0xff] %v677_v40  ;;  %934 = vst [vmem:[%s1569_s18 + $0x658] sm:$0xff] %v678_v44  ;;  %v703_v31 = vadd.f32 %v1543_v7, %v435_v28  ;;  %v704_v32 = vadd.f32 %v1545_v8, %v436_v29  ;;  %v437_v33 = vld [vmem:[%s1531_s4 + $0x730] sm:$0xff]  ;;  %v438_v34 = vld [vmem:[%s1531_s4 + $0x738] sm:$0xff] }
  0xca   : > { %935 = vst [vmem:[%s1569_s18 + $0x660] sm:$0xff] %v679_v45  ;;  %936 = vst [vmem:[%s1569_s18 + $0x668] sm:$0xff] %v680_v46  ;;  %v439_v35 = vld [vmem:[%s1531_s4 + $0x740] sm:$0xff]  ;;  %v705_v36 = vadd.f32 %v1543_v7, %v437_v33  ;;  %v706_v37 = vadd.f32 %v1545_v8, %v438_v34  ;;  %v440_v39 = vld [vmem:[%s1531_s4 + $0x748] sm:$0xff] }
  0xcb   : > { %937 = vst [vmem:[%s1569_s18 + $0x670] sm:$0xff] %v681_v50  ;;  %938 = vst [vmem:[%s1569_s18 + $0x678] sm:$0xff] %v682_v51  ;;  %v707_v38 = vadd.f32 %v1543_v7, %v439_v35  ;;  %v441_v40 = vld [vmem:[%s1531_s4 + $0x750] sm:$0xff]  ;;  %v442_v41 = vld [vmem:[%s1531_s4 + $0x758] sm:$0xff]  ;;  %v708_v42 = vadd.f32 %v1545_v8, %v440_v39 }
  0xcc   : > { %939 = vst [vmem:[%s1569_s18 + $0x680] sm:$0xff] %v683_v52  ;;  %940 = vst [vmem:[%s1569_s18 + $0x688] sm:$0xff] %v684_v56  ;;  %v709_v43 = vadd.f32 %v1543_v7, %v441_v40  ;;  %v710_v44 = vadd.f32 %v1545_v8, %v442_v41  ;;  %v443_v45 = vld [vmem:[%s1531_s4 + $0x760] sm:$0xff]  ;;  %v444_v46 = vld [vmem:[%s1531_s4 + $0x768] sm:$0xff] }
  0xcd   : > { %941 = vst [vmem:[%s1569_s18 + $0x690] sm:$0xff] %v685_v57  ;;  %942 = vst [vmem:[%s1569_s18 + $0x698] sm:$0xff] %v686_v58  ;;  %v445_v47 = vld [vmem:[%s1531_s4 + $0x770] sm:$0xff]  ;;  %v711_v48 = vadd.f32 %v1543_v7, %v443_v45  ;;  %v712_v49 = vadd.f32 %v1545_v8, %v444_v46  ;;  %v446_v51 = vld [vmem:[%s1531_s4 + $0x778] sm:$0xff] }
  0xce   : > { %943 = vst [vmem:[%s1569_s18 + $0x6a0] sm:$0xff] %v687_v62  ;;  %944 = vst [vmem:[%s1569_s18 + $0x6a8] sm:$0xff] %v688_v63  ;;  %v713_v50 = vadd.f32 %v1543_v7, %v445_v47  ;;  %v447_v52 = vld [vmem:[%s1531_s4 + $0x780] sm:$0xff]  ;;  %v448_v53 = vld [vmem:[%s1531_s4 + $0x788] sm:$0xff]  ;;  %v714_v54 = vadd.f32 %v1545_v8, %v446_v51 }
  0xcf   : > { %945 = vst [vmem:[%s1569_s18 + $0x6b0] sm:$0xff] %v689_v0  ;;  %946 = vst [vmem:[%s1569_s18 + $0x6b8] sm:$0xff] %v690_v4  ;;  %v715_v55 = vadd.f32 %v1543_v7, %v447_v52  ;;  %v716_v56 = vadd.f32 %v1545_v8, %v448_v53  ;;  %v449_v57 = vld [vmem:[%s1531_s4 + $0x790] sm:$0xff]  ;;  %v450_v58 = vld [vmem:[%s1531_s4 + $0x798] sm:$0xff] }
  0xd0   : > { %947 = vst [vmem:[%s1569_s18 + $0x6c0] sm:$0xff] %v691_v5  ;;  %948 = vst [vmem:[%s1569_s18 + $0x6c8] sm:$0xff] %v692_v6  ;;  %v451_v59 = vld [vmem:[%s1531_s4 + $0x7a0] sm:$0xff]  ;;  %v717_v60 = vadd.f32 %v1543_v7, %v449_v57  ;;  %v718_v61 = vadd.f32 %v1545_v8, %v450_v58  ;;  %v452_v63 = vld [vmem:[%s1531_s4 + $0x7a8] sm:$0xff] }
  0xd1   : > { %949 = vst [vmem:[%s1569_s18 + $0x6d0] sm:$0xff] %v693_v12  ;;  %950 = vst [vmem:[%s1569_s18 + $0x6d8] sm:$0xff] %v694_v13  ;;  %v719_v62 = vadd.f32 %v1543_v7, %v451_v59  ;;  %v453_v0 = vld [vmem:[%s1531_s4 + $0x7b0] sm:$0xff]  ;;  %v454_v1 = vld [vmem:[%s1531_s4 + $0x7b8] sm:$0xff]  ;;  %v720_v2 = vadd.f32 %v1545_v8, %v452_v63 }
  0xd2   : > { %951 = vst [vmem:[%s1569_s18 + $0x6e0] sm:$0xff] %v695_v14  ;;  %952 = vst [vmem:[%s1569_s18 + $0x6e8] sm:$0xff] %v696_v18  ;;  %v721_v3 = vadd.f32 %v1543_v7, %v453_v0  ;;  %v722_v4 = vadd.f32 %v1545_v8, %v454_v1  ;;  %v455_v5 = vld [vmem:[%s1531_s4 + $0x7c0] sm:$0xff]  ;;  %v456_v6 = vld [vmem:[%s1531_s4 + $0x7c8] sm:$0xff] }
  0xd3   : > { %953 = vst [vmem:[%s1569_s18 + $0x6f0] sm:$0xff] %v697_v19  ;;  %954 = vst [vmem:[%s1569_s18 + $0x6f8] sm:$0xff] %v698_v20  ;;  %v457_v9 = vld [vmem:[%s1531_s4 + $0x7d0] sm:$0xff]  ;;  %v723_v10 = vadd.f32 %v1543_v7, %v455_v5  ;;  %v724_v11 = vadd.f32 %v1545_v8, %v456_v6  ;;  %v458_v13 = vld [vmem:[%s1531_s4 + $0x7d8] sm:$0xff] }
  0xd4   : > { %955 = vst [vmem:[%s1569_s18 + $0x700] sm:$0xff] %v699_v24  ;;  %956 = vst [vmem:[%s1569_s18 + $0x708] sm:$0xff] %v700_v25  ;;  %v725_v12 = vadd.f32 %v1543_v7, %v457_v9  ;;  %v459_v14 = vld [vmem:[%s1531_s4 + $0x7e0] sm:$0xff]  ;;  %v460_v15 = vld [vmem:[%s1531_s4 + $0x7e8] sm:$0xff]  ;;  %v726_v16 = vadd.f32 %v1545_v8, %v458_v13 }
  0xd5   : > { %957 = vst [vmem:[%s1569_s18 + $0x710] sm:$0xff] %v701_v26  ;;  %958 = vst [vmem:[%s1569_s18 + $0x718] sm:$0xff] %v702_v30  ;;  %v727_v17 = vadd.f32 %v1543_v7, %v459_v14  ;;  %v728_v18 = vadd.f32 %v1545_v8, %v460_v15  ;;  %v461_v19 = vld [vmem:[%s1531_s4 + $0x7f0] sm:$0xff]  ;;  %v462_v20 = vld [vmem:[%s1531_s4 + $0x7f8] sm:$0xff] }
  0xd6   : > { %959 = vst [vmem:[%s1569_s18 + $0x720] sm:$0xff] %v703_v31  ;;  %960 = vst [vmem:[%s1569_s18 + $0x728] sm:$0xff] %v704_v32  ;;  %v729_v21 = vadd.f32 %v1543_v7, %v461_v19  ;;  %v730_v22 = vadd.f32 %v1545_v8, %v462_v20 }
  0xd7   : > { %961 = vst [vmem:[%s1569_s18 + $0x730] sm:$0xff] %v705_v36  ;;  %962 = vst [vmem:[%s1569_s18 + $0x738] sm:$0xff] %v706_v37 }
  0xd8   : > { %963 = vst [vmem:[%s1569_s18 + $0x740] sm:$0xff] %v707_v38  ;;  %964 = vst [vmem:[%s1569_s18 + $0x748] sm:$0xff] %v708_v42 }
  0xd9   : > { %965 = vst [vmem:[%s1569_s18 + $0x750] sm:$0xff] %v709_v43  ;;  %966 = vst [vmem:[%s1569_s18 + $0x758] sm:$0xff] %v710_v44 }
  0xda   : > { %967 = vst [vmem:[%s1569_s18 + $0x760] sm:$0xff] %v711_v48  ;;  %968 = vst [vmem:[%s1569_s18 + $0x768] sm:$0xff] %v712_v49 }
  0xdb   : > { %969 = vst [vmem:[%s1569_s18 + $0x770] sm:$0xff] %v713_v50  ;;  %970 = vst [vmem:[%s1569_s18 + $0x778] sm:$0xff] %v714_v54 }
  0xdc   : > { %971 = vst [vmem:[%s1569_s18 + $0x780] sm:$0xff] %v715_v55  ;;  %972 = vst [vmem:[%s1569_s18 + $0x788] sm:$0xff] %v716_v56 }
  0xdd   : > { %973 = vst [vmem:[%s1569_s18 + $0x790] sm:$0xff] %v717_v60  ;;  %974 = vst [vmem:[%s1569_s18 + $0x798] sm:$0xff] %v718_v61 }
  0xde   : > { %975 = vst [vmem:[%s1569_s18 + $0x7a0] sm:$0xff] %v719_v62  ;;  %976 = vst [vmem:[%s1569_s18 + $0x7a8] sm:$0xff] %v720_v2 }
  0xdf   : > { %977 = vst [vmem:[%s1569_s18 + $0x7b0] sm:$0xff] %v721_v3  ;;  %978 = vst [vmem:[%s1569_s18 + $0x7b8] sm:$0xff] %v722_v4 }
  0xe0   : > { %979 = vst [vmem:[%s1569_s18 + $0x7c0] sm:$0xff] %v723_v10  ;;  %980 = vst [vmem:[%s1569_s18 + $0x7c8] sm:$0xff] %v724_v11 }
  0xe1   : > { %981 = vst [vmem:[%s1569_s18 + $0x7d0] sm:$0xff] %v725_v12  ;;  %982 = vst [vmem:[%s1569_s18 + $0x7d8] sm:$0xff] %v726_v16 }
  0xe2   : > { %983 = vst [vmem:[%s1569_s18 + $0x7e0] sm:$0xff] %v727_v17  ;;  %984 = vst [vmem:[%s1569_s18 + $0x7e8] sm:$0xff] %v728_v18 }
  0xe3   : > { %985 = vst [vmem:[%s1569_s18 + $0x7f0] sm:$0xff] %v729_v21  ;;  %986 = vst [vmem:[%s1569_s18 + $0x7f8] sm:$0xff] %v730_v22 }
  0xe4   : > { %1274 = shalt.err (!%p1271_p7)
}
  0xe5   : > { %s1275_s27 = scalar_lea.hbm %s2312_s7, 32768  ;;  %s1279_s16 = scalar_lea.hbm %s2375_s2, 65536 }
  0xe6   : > { %p1276_p13 = scmp.ne.s32.totalorder %s2312_s7, %s1275_s27  ;;  %p1280_p12 = scmp.lt.u32.totalorder %s2312_s7, %s2375_s2 }
  0xe7   : > { %p1281_p4 = scmp.lt.u32.totalorder %s1279_s16, %s1275_s27  ;;  %p1283_p5 = scmp.lt.u32.totalorder %s1275_s27, %s2312_s7 }
  0xe8   : > { %p1277_p2 = pnand %p1276_p13, %p2396_p10 }
  0xe9   : > { %p1282_p8 = por %p1281_p4, %p1280_p12 }
  0xea   : > { %p1278_p6 = pneg %p1277_p2 }
  0xeb   : > { %p1284_p11 = por %p1283_p5, %p1282_p8 }
  0xed   : > { %p1285_p1 = pnand %p1284_p11, %p1278_p6 }
  0xef   : > { %1288 = shalt.err (!%p1285_p1)
}
  0xf0   : > { %s1354_s4 = smov 256   ;;  %s1355_s18 = smov 16  }
  0xf1   : > { %1132 = dma.vmem_to_hbm [thread:$0]  (%p2396_p10), %s2314_s23, 32768, %s2312_s7, %s988_s15, %s1354_s4, %s1354_s4, %s1355_s18  }
  0xf2 PF: > { %s1019_s20 = sand.u32 1, %s1327_s9   ;;  %p2397_p0 = scmp.ne.s32.totalorder %s2386_s22, 0 }
  0xf3   : > { %p2398_p9 = scmp.ge.s32.totalorder %s1347_s14, 2  ;;  %s1020_s12 = scalar_lea.sflag [#allocation4], %s1019_s20 }
  0xf5   : > { %p1143_p3 = pnand %p2398_p9, %p2397_p0 }
  0xf7   : > { %1322 = dma.done.wait (!%p1143_p3), %s1020_s12, 32768  }
  0xf8   : > { %1324 = vsyncadd (!%p1143_p3), %s1020_s12, 4294934528  ;;  %s19_s14 = sadd.s32 1, %s1347_s14   ;;  %s2399_s9 = smov %s1331_s10 }
  0xf9   : > { %p16_p7 = scmp.ge.s32.totalorder %s19_s14, 4   ;;  %s2400_s10 = smov %s1335_s11 }
  0xfa   : > { %s2401_s11 = smov %s1490_s25  ;;  %s2402_s12 = smov %s1343_s13 }
  0xfb   : > { %s2403_s13 = smov %s2405_s28  ;;  %18 = sbr.rel (!%p16_p7) target bundleno = 7 (0x7), region = 78 }
 0x102   :  { %1025 = vsyncpa [#allocation3], 1 }
 0x103   :  { %1027 = vsyncpa [#allocation3 + $0x1], 1 }
 0x104   :  { %1028 = vsyncpa [#allocation6], 1 }
 0x105   :  { %1029 = vsyncpa [#allocation4], 1 }
 0x106   :  { %1031 = vsyncpa [#allocation4 + $0x1], 1 }

</bundles_post_ra>
